<compile_context>
chip_gen: v7x
topology: tpu7x:2x2x1
jax: 0.10.0
libtpu: 0.0.40
codegen_flags: <defaults>
</compile_context>

<pallas_src>
import math

import jax
import jax.numpy as jnp
from jax.experimental import pallas as pl
from jax.experimental.pallas import tpu as pltpu

# ----------------------------- config (small BERT) -----------------------------
HIDDEN = 32
HEADS = 2
HEAD_DIM = HIDDEN // HEADS
INTERMEDIATE = 64
NUM_LAYERS = 2
MAX_POSITIONS = 64
LN_EPS = 1e-12

_W_COLS = 256                       # lane-padded packed-weight width (multiple of 128)
_W_ROWS = HIDDEN + INTERMEDIATE     # 96 rows: [H rows of qkv|ao|ffn-in ; INTER rows of ffn-out]
_VEC_COLS = 128                     # lane-dense bias/LN row slab
_VEC_ROWS_PER_LAYER = 8


# ----------------------------- fused Pallas kernel -----------------------------
def _fused_bert_kernel(x_ref, rows_ref, bidc_ref, w_ref, vecs_ref, out_ref):
    f32, bf16 = jnp.float32, jnp.bfloat16
    H, I3 = HIDDEN, 3 * HIDDEN

    def layer_norm(h, g, b):
        mean = jnp.mean(h, axis=-1, keepdims=True)
        var = jnp.mean(jnp.square(h - mean), axis=-1, keepdims=True)
        return (h - mean) * jax.lax.rsqrt(var + LN_EPS) * g + b

    def gelu(y):
        # TODO(synk): HF BERT uses exact erf-GELU; tanh approximation kept for portable
        # Mosaic lowering (difference ~1e-3, mirrored by the pure-JAX reference below).
        c = math.sqrt(2.0 / math.pi)
        return 0.5 * y * (1.0 + jnp.tanh(c * (y + 0.044715 * y * y * y)))

    vecs = vecs_ref[...]                                  # (2 + 8L, 128) f32 bias/LN slab

    # ---- additive attention bias built in-kernel (block-diag batches + key padding) ----
    rows = rows_ref[...]                                  # (2, M): row0 = keep, row1 = batch id
    keep = rows[0:1, :] > 0.5                             # (1, M)
    bid_row = rows[1:2, :]                                # (1, M)
    bid_col = bidc_ref[...]                               # (M, 1)
    allowed = jnp.logical_and(bid_col == bid_row, keep)   # (M, M)
    bias = jnp.where(allowed, 0.0, -1e9).astype(f32)      # shared by all heads and layers

    # ---- embedding LayerNorm (word + pos + token-type sum done in the wrapper) ----
    x = layer_norm(x_ref[...].astype(f32), vecs[0:1, :H], vecs[1:2, :H])     # (M, H)

    # TODO(synk): layers are Python-unrolled with all weights VMEM-resident (fine at toy size);
    # a non-toy config must stream layers over a trailing "arbitrary" grid axis and tile M.
    for li in range(NUM_LAYERS):
        w = w_ref[li]                                     # (H+INTER, 256) bf16 packed slab
        qkv_w = w[0:H, 0:I3]                              # (H, 3H) — softmax scale pre-folded into Q
        ao_w = w[0:H, I3:I3 + H]                          # (H, H)
        i_w = w[0:H, I3 + H:I3 + H + INTERMEDIATE]        # (H, INTER)
        o_w = w[H:H + INTERMEDIATE, 0:H]                  # (INTER, H)

        base = 2 + _VEC_ROWS_PER_LAYER * li
        qkv_b = vecs[base + 0:base + 1, :I3]
        ao_b = vecs[base + 1:base + 2, :H]
        ao_g = vecs[base + 2:base + 3, :H]
        ao_bt = vecs[base + 3:base + 4, :H]
        i_b = vecs[base + 4:base + 5, :INTERMEDIATE]
        o_b = vecs[base + 5:base + 6, :H]
        o_g = vecs[base + 6:base + 7, :H]
        o_bt = vecs[base + 7:base + 8, :H]

        # Fused Q|K|V projection: one bf16 MXU pass, f32 accumulate.
        qkv = jnp.dot(x.astype(bf16), qkv_w, preferred_element_type=f32) + qkv_b   # (M, 3H)
        qkv_bf = qkv.astype(bf16)
        kt = jnp.transpose(qkv[:, H:2 * H]).astype(bf16)   # (H, M): one K transpose per layer

        attn = jnp.zeros((x.shape[0], H), f32)
        for h in range(HEADS):                             # unrolled; static slices of the slab
            lo, hi = h * HEAD_DIM, (h + 1) * HEAD_DIM
            q_h = qkv_bf[:, lo:hi]                         # (M, Dh), scale folded into weights
            kt_h = kt[lo:hi, :]                            # (Dh, M) — sublane-aligned row slice
            v_h = qkv_bf[:, 2 * H + lo:2 * H + hi]         # (M, Dh)

            s = jnp.dot(q_h, kt_h, preferred_element_type=f32) + bias      # (M, M)
            s = s - jnp.max(s, axis=-1, keepdims=True)
            p = jnp.exp(s)
            p = p * pl.reciprocal(jnp.sum(p, axis=-1, keepdims=True), approx=True)
            ctx = jnp.dot(p.astype(bf16), v_h, preferred_element_type=f32)  # (M, Dh)
            # merge_heads + output projection == sum_h ctx_h @ W_out[rows of head h]
            attn = attn + jnp.dot(ctx.astype(bf16), ao_w[lo:hi, :],
                                  preferred_element_type=f32)

        x = layer_norm(attn + ao_b + x, ao_g, ao_bt)

        inter = gelu(jnp.dot(x.astype(bf16), i_w, preferred_element_type=f32) + i_b)  # (M, INTER)
        ffn = jnp.dot(inter.astype(bf16), o_w, preferred_element_type=f32) + o_b
        x = layer_norm(ffn + x, o_g, o_bt)

    # TODO(synk): output kept (M, H) with H=32 (<128 lanes); a lane-dense (M*H/128, 128)
    # out layout only pays off once H / S scale.
    out_ref[...] = x.astype(out_ref.dtype)


# ----------------------------- synthetic BERT params ---------------------------
def init_params(key):
    def dense(k, fan_in, fan_out):
        kw, kb = jax.random.split(k)
        return (jax.random.normal(kw, (fan_in, fan_out), jnp.float32) * 0.02,
                jax.random.normal(kb, (fan_out,), jnp.float32) * 0.02)

    keys = jax.random.split(key, 2 + NUM_LAYERS)
    params = {
        "pos_emb": jax.random.normal(keys[0], (MAX_POSITIONS, HIDDEN), jnp.float32) * 0.02,
        "tok_emb": jax.random.normal(keys[1], (2, HIDDEN), jnp.float32) * 0.02,
        "emb_ln_g": jnp.ones((HIDDEN,), jnp.float32),
        "emb_ln_b": jnp.zeros((HIDDEN,), jnp.float32),
    }
    names = ["q_w", "k_w", "v_w", "ao_w", "i_w", "o_w",
             "q_b", "k_b", "v_b", "ao_b", "i_b", "o_b",
             "ao_ln_g", "ao_ln_b", "o_ln_g", "o_ln_b"]
    per = {n: [] for n in names}
    for li in range(NUM_LAYERS):
        lk = jax.random.split(keys[2 + li], 6)
        qw, qb = dense(lk[0], HIDDEN, HIDDEN)
        kw, kb = dense(lk[1], HIDDEN, HIDDEN)
        vw, vb = dense(lk[2], HIDDEN, HIDDEN)
        aow, aob = dense(lk[3], HIDDEN, HIDDEN)
        iw, ib = dense(lk[4], HIDDEN, INTERMEDIATE)
        ow, ob = dense(lk[5], INTERMEDIATE, HIDDEN)
        per["q_w"].append(qw);  per["q_b"].append(qb)
        per["k_w"].append(kw);  per["k_b"].append(kb)
        per["v_w"].append(vw);  per["v_b"].append(vb)
        per["ao_w"].append(aow); per["ao_b"].append(aob)
        per["i_w"].append(iw);  per["i_b"].append(ib)
        per["o_w"].append(ow);  per["o_b"].append(ob)
        per["ao_ln_g"].append(jnp.ones((HIDDEN,), jnp.float32))
        per["ao_ln_b"].append(jnp.zeros((HIDDEN,), jnp.float32))
        per["o_ln_g"].append(jnp.ones((HIDDEN,), jnp.float32))
        per["o_ln_b"].append(jnp.zeros((HIDDEN,), jnp.float32))
    params.update({k: jnp.stack(v) for k, v in per.items()})
    return params


# ----------------------------- parameter packing --------------------------------
def _row128(v):
    v = jnp.asarray(v, jnp.float32).reshape(-1)
    return jnp.pad(v, (0, _VEC_COLS - v.shape[0]))


def pack_params(params):
    """Pack weights into one bf16 slab per layer + one f32 bias/LN row slab (done in XLA)."""
    scale = 1.0 / math.sqrt(HEAD_DIM)          # exact power of two -> folding is bit-exact in bf16
    w_layers = []
    vec_rows = [_row128(params["emb_ln_g"]), _row128(params["emb_ln_b"])]
    for li in range(NUM_LAYERS):
        top = jnp.concatenate(
            [params["q_w"][li] * scale, params["k_w"][li], params["v_w"][li],
             params["ao_w"][li], params["i_w"][li]], axis=1)                       # (H, 192)
        top = jnp.pad(top, ((0, 0), (0, _W_COLS - top.shape[1])))                  # (H, 256)
        bot = jnp.pad(params["o_w"][li], ((0, 0), (0, _W_COLS - HIDDEN)))          # (INTER, 256)
        w_layers.append(jnp.concatenate([top, bot], axis=0).astype(jnp.bfloat16))  # (96, 256)
        vec_rows += [
            _row128(jnp.concatenate([params["q_b"][li] * scale,
                                     params["k_b"][li], params["v_b"][li]])),
            _row128(params["ao_b"][li]),
            _row128(params["ao_ln_g"][li]), _row128(params["ao_ln_b"][li]),
            _row128(params["i_b"][li]),
            _row128(params["o_b"][li]),
            _row128(params["o_ln_g"][li]), _row128(params["o_ln_b"][li]),
        ]
    return jnp.stack(w_layers), jnp.stack(vec_rows)


# ----------------------------- forward_embeds ----------------------------------
def forward_embeds(params, embeds, attention_mask=None, position_ids=None):
    """Equivalent of BertWrapper.forward_embeds: returns last_hidden_state (B, S, H)."""
    B, S, H = embeds.shape
    assert H == HIDDEN
    M = B * S
    if position_ids is None:
        position_ids = jnp.arange(S, dtype=jnp.int32)
    position_ids = jnp.asarray(position_ids, jnp.int32)
    if position_ids.ndim == 1:                          # HF accepts (S,) or (B, S)
        position_ids = jnp.broadcast_to(position_ids[None, :], (B, S))
    if attention_mask is None:
        attention_mask = jnp.ones((B, S), jnp.float32)

    # word + position + token-type(0) embedding sum done once here (gather stays in XLA).
    x_in = (embeds.astype(jnp.float32) + params["pos_emb"][position_ids]
            + params["tok_emb"][0]).reshape(M, H)

    # Tiny mask ingredients; the (M, M) additive bias itself is built in-kernel.
    batch_id = jnp.repeat(jnp.arange(B, dtype=jnp.float32), S)                 # (M,)
    keep = attention_mask.reshape(M).astype(jnp.float32)
    keep_bid_rows = jnp.stack([keep, batch_id], axis=0)                        # (2, M)
    bid_col = batch_id.reshape(M, 1)                                           # (M, 1)

    w_slab, vec_slab = pack_params(params)

    inputs = (x_in, keep_bid_rows, bid_col, w_slab, vec_slab)

    # Rough cost hint so XLA schedules the surrounding gather/packing HLO around the fused op.
    flops = NUM_LAYERS * (2 * M * H * (3 * H)
                          + HEADS * (2 * M * M * HEAD_DIM) * 2
                          + 2 * M * H * H
                          + 2 * M * H * INTERMEDIATE + 2 * M * INTERMEDIATE * H)
    transcendentals = NUM_LAYERS * (HEADS * M * M + M * INTERMEDIATE) + M * (1 + 2 * NUM_LAYERS)
    bytes_accessed = sum(int(a.size) * a.dtype.itemsize for a in inputs) + M * H * 4

    vmem_spec = pl.BlockSpec(memory_space=pltpu.MemorySpace.VMEM)
    out = pl.pallas_call(
        _fused_bert_kernel,
        out_shape=jax.ShapeDtypeStruct((M, H), embeds.dtype),
        in_specs=[vmem_spec] * len(inputs),
        out_specs=vmem_spec,
        cost_estimate=pl.CostEstimate(flops=int(flops),
                                      transcendentals=int(transcendentals),
                                      bytes_accessed=int(bytes_accessed)),
    )(*inputs)
    return out.reshape(B, S, H)


# ----------------------------- pure-JAX reference ------------------------------
def forward_embeds_ref(params, embeds, attention_mask=None, position_ids=None):
    B, S, H = embeds.shape
    if position_ids is None:
        position_ids = jnp.arange(S, dtype=jnp.int32)
    position_ids = jnp.asarray(position_ids, jnp.int32)
    if position_ids.ndim == 1:
        position_ids = jnp.broadcast_to(position_ids[None, :], (B, S))
    if attention_mask is None:
        attention_mask = jnp.ones((B, S), jnp.float32)

    f32, bf16 = jnp.float32, jnp.bfloat16
    r = lambda a: a.astype(bf16).astype(f32)   # emulate bf16 MXU operands with f32 accumulation

    def ln(h, g, b):
        mean = jnp.mean(h, axis=-1, keepdims=True)
        var = jnp.mean(jnp.square(h - mean), axis=-1, keepdims=True)
        return (h - mean) * jax.lax.rsqrt(var + LN_EPS) * g + b

    def gelu(y):
        c = math.sqrt(2.0 / math.pi)
        return 0.5 * y * (1.0 + jnp.tanh(c * (y + 0.044715 * y * y * y)))

    x = ln(embeds + params["pos_emb"][position_ids] + params["tok_emb"][0],
           params["emb_ln_g"], params["emb_ln_b"])
    ext = (1.0 - attention_mask.astype(f32))[:, None, None, :] * -1e9
    scale = 1.0 / math.sqrt(HEAD_DIM)
    heads = lambda t: t.reshape(B, S, HEADS, HEAD_DIM).transpose(0, 2, 1, 3)
    for li in range(NUM_LAYERS):
        q = r(x) @ r(params["q_w"][li]) + params["q_b"][li]
        k = r(x) @ r(params["k_w"][li]) + params["k_b"][li]
        v = r(x) @ r(params["v_w"][li]) + params["v_b"][li]
        qh, kh, vh = heads(q), heads(k), heads(v)
        s = jnp.einsum("bhqd,bhkd->bhqk", r(qh), r(kh)) * scale + ext
        p = jax.nn.softmax(s, axis=-1)
        ctx = jnp.einsum("bhqk,bhkd->bhqd", r(p), r(vh)).transpose(0, 2, 1, 3).reshape(B, S, H)
        attn = r(ctx) @ r(params["ao_w"][li]) + params["ao_b"][li]
        x = ln(attn + x, params["ao_ln_g"][li], params["ao_ln_b"][li])
        inter = gelu(r(x) @ r(params["i_w"][li]) + params["i_b"][li])
        ffn = r(inter) @ r(params["o_w"][li]) + params["o_b"][li]
        x = ln(ffn + x, params["o_ln_g"][li], params["o_ln_b"][li])
    return x


# ----------------------------- main ---------------------------------------------
if __name__ == "__main__":
    B, S = 2, 8
    key = jax.random.PRNGKey(0)
    pkey, ekey = jax.random.split(key)
    params = init_params(pkey)
    embeds = jax.random.normal(ekey, (B, S, HIDDEN), jnp.float32)
    # Exercise the key-padding mask path: last two tokens of batch 1 are padding.
    attention_mask = jnp.ones((B, S), jnp.float32).at[1, S - 2:].set(0.0)

    fwd = jax.jit(lambda e, m: forward_embeds(params, e, m))
    out = jax.block_until_ready(fwd(embeds, attention_mask))

    assert out.shape == (B, S, HIDDEN) and out.dtype == jnp.float32
    assert bool(jnp.all(jnp.isfinite(out)))

    ref = forward_embeds_ref(params, embeds, attention_mask)
    max_err = float(jnp.max(jnp.abs(out - ref)))
    assert max_err < 5e-2, f"mismatch vs pure-JAX reference: {max_err}"

    print("KERNEL_OK")
</pallas_src>

<mosaic_0001>
module attributes {stable_mosaic.version = 11 : i64} {
  func.func @_fused_bert_kernel(%arg0: memref<16x32xf32, #tpu.memory_space<vmem>>, %arg1: memref<2x16xf32, #tpu.memory_space<vmem>>, %arg2: memref<16x1xf32, #tpu.memory_space<vmem>>, %arg3: memref<2x96x256xbf16, #tpu.memory_space<vmem>>, %arg4: memref<18x128xf32, #tpu.memory_space<vmem>>, %arg5: memref<16x32xf32, #tpu.memory_space<vmem>>) attributes {dimension_semantics = [], scalar_prefetch = 0 : i64, scratch_operands = 0 : i64, tpu.core_type = #tpu.core_type<tc>} {
    %c0 = arith.constant 0 : index
    %c0_0 = arith.constant 0 : index
    %0 = vector.load %arg4[%c0, %c0_0] : memref<18x128xf32, #tpu.memory_space<vmem>>, vector<18x128xf32>
    %c0_1 = arith.constant 0 : index
    %c0_2 = arith.constant 0 : index
    %1 = vector.load %arg1[%c0_1, %c0_2] : memref<2x16xf32, #tpu.memory_space<vmem>>, vector<2x16xf32>
    %2 = vector.extract_strided_slice %1 {offsets = [0, 0], sizes = [1, 16], strides = [1, 1]} : vector<2x16xf32> to vector<1x16xf32>
    %cst = arith.constant 5.000000e-01 : f32
    %3 = vector.broadcast %cst : f32 to vector<1x16xf32>
    %4 = arith.cmpf ogt, %2, %3 : vector<1x16xf32>
    %5 = vector.extract_strided_slice %1 {offsets = [1, 0], sizes = [1, 16], strides = [1, 1]} : vector<2x16xf32> to vector<1x16xf32>
    %c0_3 = arith.constant 0 : index
    %c0_4 = arith.constant 0 : index
    %6 = vector.load %arg2[%c0_3, %c0_4] : memref<16x1xf32, #tpu.memory_space<vmem>>, vector<16x1xf32>
    %7 = vector.broadcast %6 : vector<16x1xf32> to vector<16x16xf32>
    %8 = vector.broadcast %5 : vector<1x16xf32> to vector<16x16xf32>
    %9 = arith.cmpf oeq, %7, %8 : vector<16x16xf32>
    %10 = vector.broadcast %4 : vector<1x16xi1> to vector<16x16xi1>
    %11 = arith.andi %9, %10 : vector<16x16xi1>
    %cst_5 = arith.constant 0.000000e+00 : f32
    %cst_6 = arith.constant -1.000000e+09 : f32
    %12 = vector.broadcast %cst_5 : f32 to vector<16x16xf32>
    %13 = vector.broadcast %cst_6 : f32 to vector<16x16xf32>
    %14 = arith.select %11, %12, %13 : vector<16x16xi1>, vector<16x16xf32>
    %c0_7 = arith.constant 0 : index
    %c0_8 = arith.constant 0 : index
    %15 = vector.load %arg0[%c0_7, %c0_8] : memref<16x32xf32, #tpu.memory_space<vmem>>, vector<16x32xf32>
    %16 = vector.extract_strided_slice %0 {offsets = [0, 0], sizes = [1, 32], strides = [1, 1]} : vector<18x128xf32> to vector<1x32xf32>
    %17 = vector.extract_strided_slice %0 {offsets = [1, 0], sizes = [1, 32], strides = [1, 1]} : vector<18x128xf32> to vector<1x32xf32>
    %cst_9 = arith.constant dense<0.000000e+00> : vector<16xf32>
    %18 = vector.multi_reduction <add>, %15, %cst_9 [1] : vector<16x32xf32> to vector<16xf32>
    %19 = vector.shape_cast %18 : vector<16xf32> to vector<16x1xf32>
    %cst_10 = arith.constant 3.200000e+01 : f32
    %20 = vector.broadcast %cst_10 : f32 to vector<16x1xf32>
    %21 = arith.divf %19, %20 : vector<16x1xf32>
    %22 = vector.broadcast %21 : vector<16x1xf32> to vector<16x32xf32>
    %23 = arith.subf %15, %22 : vector<16x32xf32>
    %24 = arith.mulf %23, %23 : vector<16x32xf32>
    %cst_11 = arith.constant dense<0.000000e+00> : vector<16xf32>
    %25 = vector.multi_reduction <add>, %24, %cst_11 [1] : vector<16x32xf32> to vector<16xf32>
    %26 = vector.shape_cast %25 : vector<16xf32> to vector<16x1xf32>
    %cst_12 = arith.constant 3.200000e+01 : f32
    %27 = vector.broadcast %cst_12 : f32 to vector<16x1xf32>
    %28 = arith.divf %26, %27 : vector<16x1xf32>
    %29 = vector.broadcast %21 : vector<16x1xf32> to vector<16x32xf32>
    %30 = arith.subf %15, %29 : vector<16x32xf32>
    %cst_13 = arith.constant 9.99999996E-13 : f32
    %31 = vector.broadcast %cst_13 : f32 to vector<16x1xf32>
    %32 = arith.addf %28, %31 : vector<16x1xf32>
    %33 = math.rsqrt %32 : vector<16x1xf32>
    %34 = vector.broadcast %33 : vector<16x1xf32> to vector<16x32xf32>
    %35 = arith.mulf %30, %34 : vector<16x32xf32>
    %36 = vector.broadcast %16 : vector<1x32xf32> to vector<16x32xf32>
    %37 = arith.mulf %35, %36 : vector<16x32xf32>
    %38 = vector.broadcast %17 : vector<1x32xf32> to vector<16x32xf32>
    %39 = arith.addf %37, %38 : vector<16x32xf32>
    %c0_14 = arith.constant 0 : index
    %c0_15 = arith.constant 0 : index
    %c0_16 = arith.constant 0 : index
    %40 = vector.load %arg3[%c0_14, %c0_15, %c0_16] : memref<2x96x256xbf16, #tpu.memory_space<vmem>>, vector<1x96x256xbf16>
    %41 = vector.shape_cast %40 : vector<1x96x256xbf16> to vector<96x256xbf16>
    %42 = vector.extract_strided_slice %41 {offsets = [0, 0], sizes = [32, 96], strides = [1, 1]} : vector<96x256xbf16> to vector<32x96xbf16>
    %43 = vector.extract_strided_slice %41 {offsets = [0, 96], sizes = [32, 32], strides = [1, 1]} : vector<96x256xbf16> to vector<32x32xbf16>
    %44 = vector.extract_strided_slice %41 {offsets = [0, 128], sizes = [32, 64], strides = [1, 1]} : vector<96x256xbf16> to vector<32x64xbf16>
    %45 = vector.extract_strided_slice %41 {offsets = [32, 0], sizes = [64, 32], strides = [1, 1]} : vector<96x256xbf16> to vector<64x32xbf16>
    %46 = vector.extract_strided_slice %0 {offsets = [2, 0], sizes = [1, 96], strides = [1, 1]} : vector<18x128xf32> to vector<1x96xf32>
    %47 = vector.extract_strided_slice %0 {offsets = [3, 0], sizes = [1, 32], strides = [1, 1]} : vector<18x128xf32> to vector<1x32xf32>
    %48 = vector.extract_strided_slice %0 {offsets = [4, 0], sizes = [1, 32], strides = [1, 1]} : vector<18x128xf32> to vector<1x32xf32>
    %49 = vector.extract_strided_slice %0 {offsets = [5, 0], sizes = [1, 32], strides = [1, 1]} : vector<18x128xf32> to vector<1x32xf32>
    %50 = vector.extract_strided_slice %0 {offsets = [6, 0], sizes = [1, 64], strides = [1, 1]} : vector<18x128xf32> to vector<1x64xf32>
    %51 = vector.extract_strided_slice %0 {offsets = [7, 0], sizes = [1, 32], strides = [1, 1]} : vector<18x128xf32> to vector<1x32xf32>
    %52 = vector.extract_strided_slice %0 {offsets = [8, 0], sizes = [1, 32], strides = [1, 1]} : vector<18x128xf32> to vector<1x32xf32>
    %53 = vector.extract_strided_slice %0 {offsets = [9, 0], sizes = [1, 32], strides = [1, 1]} : vector<18x128xf32> to vector<1x32xf32>
    %54 = arith.truncf %39 : vector<16x32xf32> to vector<16x32xbf16>
    %cst_17 = arith.constant dense<0.000000e+00> : vector<16x96xf32>
    %55 = tpu.matmul %54, %42, %cst_17 {dimension_numbers = #tpu.dot_dimension_numbers<[1], [0], [0], [1], [0, 0, 1, 1], [], []>} : vector<16x32xbf16>, vector<32x96xbf16>, vector<16x96xf32> -> vector<16x96xf32>
    %56 = vector.broadcast %46 : vector<1x96xf32> to vector<16x96xf32>
    %57 = arith.addf %55, %56 : vector<16x96xf32>
    %58 = arith.truncf %57 : vector<16x96xf32> to vector<16x96xbf16>
    %59 = vector.extract_strided_slice %57 {offsets = [0, 32], sizes = [16, 32], strides = [1, 1]} : vector<16x96xf32> to vector<16x32xf32>
    %60 = tpu.transpose %59, [1, 0] : vector<16x32xf32> -> vector<32x16xf32>
    %61 = arith.truncf %60 : vector<32x16xf32> to vector<32x16xbf16>
    %cst_18 = arith.constant 0.000000e+00 : f32
    %62 = vector.broadcast %cst_18 : f32 to vector<16x32xf32>
    %63 = vector.extract_strided_slice %58 {offsets = [0, 0], sizes = [16, 16], strides = [1, 1]} : vector<16x96xbf16> to vector<16x16xbf16>
    %64 = vector.extract_strided_slice %61 {offsets = [0, 0], sizes = [16, 16], strides = [1, 1]} : vector<32x16xbf16> to vector<16x16xbf16>
    %65 = vector.extract_strided_slice %58 {offsets = [0, 64], sizes = [16, 16], strides = [1, 1]} : vector<16x96xbf16> to vector<16x16xbf16>
    %cst_19 = arith.constant dense<0.000000e+00> : vector<16x16xf32>
    %66 = tpu.matmul %63, %64, %cst_19 {dimension_numbers = #tpu.dot_dimension_numbers<[1], [0], [0], [1], [0, 0, 1, 1], [], []>} : vector<16x16xbf16>, vector<16x16xbf16>, vector<16x16xf32> -> vector<16x16xf32>
    %67 = arith.addf %66, %14 : vector<16x16xf32>
    %cst_20 = arith.constant dense<0xFF800000> : vector<16xf32>
    %68 = vector.multi_reduction <maximumf>, %67, %cst_20 [1] : vector<16x16xf32> to vector<16xf32>
    %69 = vector.shape_cast %68 : vector<16xf32> to vector<16x1xf32>
    %70 = vector.broadcast %69 : vector<16x1xf32> to vector<16x16xf32>
    %71 = arith.subf %67, %70 : vector<16x16xf32>
    %72 = math.exp %71 : vector<16x16xf32>
    %cst_21 = arith.constant dense<0.000000e+00> : vector<16xf32>
    %73 = vector.multi_reduction <add>, %72, %cst_21 [1] : vector<16x16xf32> to vector<16xf32>
    %74 = vector.shape_cast %73 : vector<16xf32> to vector<16x1xf32>
    %75 = tpu.reciprocal %74 {approx = true} : vector<16x1xf32> -> vector<16x1xf32>
    %76 = vector.broadcast %75 : vector<16x1xf32> to vector<16x16xf32>
    %77 = arith.mulf %72, %76 : vector<16x16xf32>
    %78 = arith.truncf %77 : vector<16x16xf32> to vector<16x16xbf16>
    %cst_22 = arith.constant dense<0.000000e+00> : vector<16x16xf32>
    %79 = tpu.matmul %78, %65, %cst_22 {dimension_numbers = #tpu.dot_dimension_numbers<[1], [0], [0], [1], [0, 0, 1, 1], [], []>} : vector<16x16xbf16>, vector<16x16xbf16>, vector<16x16xf32> -> vector<16x16xf32>
    %80 = arith.truncf %79 : vector<16x16xf32> to vector<16x16xbf16>
    %81 = vector.extract_strided_slice %43 {offsets = [0, 0], sizes = [16, 32], strides = [1, 1]} : vector<32x32xbf16> to vector<16x32xbf16>
    %cst_23 = arith.constant dense<0.000000e+00> : vector<16x32xf32>
    %82 = tpu.matmul %80, %81, %cst_23 {dimension_numbers = #tpu.dot_dimension_numbers<[1], [0], [0], [1], [0, 0, 1, 1], [], []>} : vector<16x16xbf16>, vector<16x32xbf16>, vector<16x32xf32> -> vector<16x32xf32>
    %83 = arith.addf %62, %82 : vector<16x32xf32>
    %84 = vector.extract_strided_slice %58 {offsets = [0, 16], sizes = [16, 16], strides = [1, 1]} : vector<16x96xbf16> to vector<16x16xbf16>
    %85 = vector.extract_strided_slice %61 {offsets = [16, 0], sizes = [16, 16], strides = [1, 1]} : vector<32x16xbf16> to vector<16x16xbf16>
    %86 = vector.extract_strided_slice %58 {offsets = [0, 80], sizes = [16, 16], strides = [1, 1]} : vector<16x96xbf16> to vector<16x16xbf16>
    %cst_24 = arith.constant dense<0.000000e+00> : vector<16x16xf32>
    %87 = tpu.matmul %84, %85, %cst_24 {dimension_numbers = #tpu.dot_dimension_numbers<[1], [0], [0], [1], [0, 0, 1, 1], [], []>} : vector<16x16xbf16>, vector<16x16xbf16>, vector<16x16xf32> -> vector<16x16xf32>
    %88 = arith.addf %87, %14 : vector<16x16xf32>
    %cst_25 = arith.constant dense<0xFF800000> : vector<16xf32>
    %89 = vector.multi_reduction <maximumf>, %88, %cst_25 [1] : vector<16x16xf32> to vector<16xf32>
    %90 = vector.shape_cast %89 : vector<16xf32> to vector<16x1xf32>
    %91 = vector.broadcast %90 : vector<16x1xf32> to vector<16x16xf32>
    %92 = arith.subf %88, %91 : vector<16x16xf32>
    %93 = math.exp %92 : vector<16x16xf32>
    %cst_26 = arith.constant dense<0.000000e+00> : vector<16xf32>
    %94 = vector.multi_reduction <add>, %93, %cst_26 [1] : vector<16x16xf32> to vector<16xf32>
    %95 = vector.shape_cast %94 : vector<16xf32> to vector<16x1xf32>
    %96 = tpu.reciprocal %95 {approx = true} : vector<16x1xf32> -> vector<16x1xf32>
    %97 = vector.broadcast %96 : vector<16x1xf32> to vector<16x16xf32>
    %98 = arith.mulf %93, %97 : vector<16x16xf32>
    %99 = arith.truncf %98 : vector<16x16xf32> to vector<16x16xbf16>
    %cst_27 = arith.constant dense<0.000000e+00> : vector<16x16xf32>
    %100 = tpu.matmul %99, %86, %cst_27 {dimension_numbers = #tpu.dot_dimension_numbers<[1], [0], [0], [1], [0, 0, 1, 1], [], []>} : vector<16x16xbf16>, vector<16x16xbf16>, vector<16x16xf32> -> vector<16x16xf32>
    %101 = arith.truncf %100 : vector<16x16xf32> to vector<16x16xbf16>
    %102 = vector.extract_strided_slice %43 {offsets = [16, 0], sizes = [16, 32], strides = [1, 1]} : vector<32x32xbf16> to vector<16x32xbf16>
    %cst_28 = arith.constant dense<0.000000e+00> : vector<16x32xf32>
    %103 = tpu.matmul %101, %102, %cst_28 {dimension_numbers = #tpu.dot_dimension_numbers<[1], [0], [0], [1], [0, 0, 1, 1], [], []>} : vector<16x16xbf16>, vector<16x32xbf16>, vector<16x32xf32> -> vector<16x32xf32>
    %104 = arith.addf %83, %103 : vector<16x32xf32>
    %105 = vector.broadcast %47 : vector<1x32xf32> to vector<16x32xf32>
    %106 = arith.addf %104, %105 : vector<16x32xf32>
    %107 = arith.addf %106, %39 : vector<16x32xf32>
    %cst_29 = arith.constant dense<0.000000e+00> : vector<16xf32>
    %108 = vector.multi_reduction <add>, %107, %cst_29 [1] : vector<16x32xf32> to vector<16xf32>
    %109 = vector.shape_cast %108 : vector<16xf32> to vector<16x1xf32>
    %cst_30 = arith.constant 3.200000e+01 : f32
    %110 = vector.broadcast %cst_30 : f32 to vector<16x1xf32>
    %111 = arith.divf %109, %110 : vector<16x1xf32>
    %112 = vector.broadcast %111 : vector<16x1xf32> to vector<16x32xf32>
    %113 = arith.subf %107, %112 : vector<16x32xf32>
    %114 = arith.mulf %113, %113 : vector<16x32xf32>
    %cst_31 = arith.constant dense<0.000000e+00> : vector<16xf32>
    %115 = vector.multi_reduction <add>, %114, %cst_31 [1] : vector<16x32xf32> to vector<16xf32>
    %116 = vector.shape_cast %115 : vector<16xf32> to vector<16x1xf32>
    %cst_32 = arith.constant 3.200000e+01 : f32
    %117 = vector.broadcast %cst_32 : f32 to vector<16x1xf32>
    %118 = arith.divf %116, %117 : vector<16x1xf32>
    %119 = vector.broadcast %111 : vector<16x1xf32> to vector<16x32xf32>
    %120 = arith.subf %107, %119 : vector<16x32xf32>
    %cst_33 = arith.constant 9.99999996E-13 : f32
    %121 = vector.broadcast %cst_33 : f32 to vector<16x1xf32>
    %122 = arith.addf %118, %121 : vector<16x1xf32>
    %123 = math.rsqrt %122 : vector<16x1xf32>
    %124 = vector.broadcast %123 : vector<16x1xf32> to vector<16x32xf32>
    %125 = arith.mulf %120, %124 : vector<16x32xf32>
    %126 = vector.broadcast %48 : vector<1x32xf32> to vector<16x32xf32>
    %127 = arith.mulf %125, %126 : vector<16x32xf32>
    %128 = vector.broadcast %49 : vector<1x32xf32> to vector<16x32xf32>
    %129 = arith.addf %127, %128 : vector<16x32xf32>
    %130 = arith.truncf %129 : vector<16x32xf32> to vector<16x32xbf16>
    %cst_34 = arith.constant dense<0.000000e+00> : vector<16x64xf32>
    %131 = tpu.matmul %130, %44, %cst_34 {dimension_numbers = #tpu.dot_dimension_numbers<[1], [0], [0], [1], [0, 0, 1, 1], [], []>} : vector<16x32xbf16>, vector<32x64xbf16>, vector<16x64xf32> -> vector<16x64xf32>
    %132 = vector.broadcast %50 : vector<1x64xf32> to vector<16x64xf32>
    %133 = arith.addf %131, %132 : vector<16x64xf32>
    %cst_35 = arith.constant 5.000000e-01 : f32
    %134 = vector.broadcast %cst_35 : f32 to vector<16x64xf32>
    %135 = arith.mulf %134, %133 : vector<16x64xf32>
    %cst_36 = arith.constant 4.471500e-02 : f32
    %136 = vector.broadcast %cst_36 : f32 to vector<16x64xf32>
    %137 = arith.mulf %136, %133 : vector<16x64xf32>
    %138 = arith.mulf %137, %133 : vector<16x64xf32>
    %139 = arith.mulf %138, %133 : vector<16x64xf32>
    %140 = arith.addf %133, %139 : vector<16x64xf32>
    %cst_37 = arith.constant 0.797884583 : f32
    %141 = vector.broadcast %cst_37 : f32 to vector<16x64xf32>
    %142 = arith.mulf %141, %140 : vector<16x64xf32>
    %143 = math.tanh %142 : vector<16x64xf32>
    %cst_38 = arith.constant 1.000000e+00 : f32
    %144 = vector.broadcast %cst_38 : f32 to vector<16x64xf32>
    %145 = arith.addf %144, %143 : vector<16x64xf32>
    %146 = arith.mulf %135, %145 : vector<16x64xf32>
    %147 = arith.truncf %146 : vector<16x64xf32> to vector<16x64xbf16>
    %cst_39 = arith.constant dense<0.000000e+00> : vector<16x32xf32>
    %148 = tpu.matmul %147, %45, %cst_39 {dimension_numbers = #tpu.dot_dimension_numbers<[1], [0], [0], [1], [0, 0, 1, 1], [], []>} : vector<16x64xbf16>, vector<64x32xbf16>, vector<16x32xf32> -> vector<16x32xf32>
    %149 = vector.broadcast %51 : vector<1x32xf32> to vector<16x32xf32>
    %150 = arith.addf %148, %149 : vector<16x32xf32>
    %151 = arith.addf %150, %129 : vector<16x32xf32>
    %cst_40 = arith.constant dense<0.000000e+00> : vector<16xf32>
    %152 = vector.multi_reduction <add>, %151, %cst_40 [1] : vector<16x32xf32> to vector<16xf32>
    %153 = vector.shape_cast %152 : vector<16xf32> to vector<16x1xf32>
    %cst_41 = arith.constant 3.200000e+01 : f32
    %154 = vector.broadcast %cst_41 : f32 to vector<16x1xf32>
    %155 = arith.divf %153, %154 : vector<16x1xf32>
    %156 = vector.broadcast %155 : vector<16x1xf32> to vector<16x32xf32>
    %157 = arith.subf %151, %156 : vector<16x32xf32>
    %158 = arith.mulf %157, %157 : vector<16x32xf32>
    %cst_42 = arith.constant dense<0.000000e+00> : vector<16xf32>
    %159 = vector.multi_reduction <add>, %158, %cst_42 [1] : vector<16x32xf32> to vector<16xf32>
    %160 = vector.shape_cast %159 : vector<16xf32> to vector<16x1xf32>
    %cst_43 = arith.constant 3.200000e+01 : f32
    %161 = vector.broadcast %cst_43 : f32 to vector<16x1xf32>
    %162 = arith.divf %160, %161 : vector<16x1xf32>
    %163 = vector.broadcast %155 : vector<16x1xf32> to vector<16x32xf32>
    %164 = arith.subf %151, %163 : vector<16x32xf32>
    %cst_44 = arith.constant 9.99999996E-13 : f32
    %165 = vector.broadcast %cst_44 : f32 to vector<16x1xf32>
    %166 = arith.addf %162, %165 : vector<16x1xf32>
    %167 = math.rsqrt %166 : vector<16x1xf32>
    %168 = vector.broadcast %167 : vector<16x1xf32> to vector<16x32xf32>
    %169 = arith.mulf %164, %168 : vector<16x32xf32>
    %170 = vector.broadcast %52 : vector<1x32xf32> to vector<16x32xf32>
    %171 = arith.mulf %169, %170 : vector<16x32xf32>
    %172 = vector.broadcast %53 : vector<1x32xf32> to vector<16x32xf32>
    %173 = arith.addf %171, %172 : vector<16x32xf32>
    %c1 = arith.constant 1 : index
    %c0_45 = arith.constant 0 : index
    %c0_46 = arith.constant 0 : index
    %174 = vector.load %arg3[%c1, %c0_45, %c0_46] : memref<2x96x256xbf16, #tpu.memory_space<vmem>>, vector<1x96x256xbf16>
    %175 = vector.shape_cast %174 : vector<1x96x256xbf16> to vector<96x256xbf16>
    %176 = vector.extract_strided_slice %175 {offsets = [0, 0], sizes = [32, 96], strides = [1, 1]} : vector<96x256xbf16> to vector<32x96xbf16>
    %177 = vector.extract_strided_slice %175 {offsets = [0, 96], sizes = [32, 32], strides = [1, 1]} : vector<96x256xbf16> to vector<32x32xbf16>
    %178 = vector.extract_strided_slice %175 {offsets = [0, 128], sizes = [32, 64], strides = [1, 1]} : vector<96x256xbf16> to vector<32x64xbf16>
    %179 = vector.extract_strided_slice %175 {offsets = [32, 0], sizes = [64, 32], strides = [1, 1]} : vector<96x256xbf16> to vector<64x32xbf16>
    %180 = vector.extract_strided_slice %0 {offsets = [10, 0], sizes = [1, 96], strides = [1, 1]} : vector<18x128xf32> to vector<1x96xf32>
    %181 = vector.extract_strided_slice %0 {offsets = [11, 0], sizes = [1, 32], strides = [1, 1]} : vector<18x128xf32> to vector<1x32xf32>
    %182 = vector.extract_strided_slice %0 {offsets = [12, 0], sizes = [1, 32], strides = [1, 1]} : vector<18x128xf32> to vector<1x32xf32>
    %183 = vector.extract_strided_slice %0 {offsets = [13, 0], sizes = [1, 32], strides = [1, 1]} : vector<18x128xf32> to vector<1x32xf32>
    %184 = vector.extract_strided_slice %0 {offsets = [14, 0], sizes = [1, 64], strides = [1, 1]} : vector<18x128xf32> to vector<1x64xf32>
    %185 = vector.extract_strided_slice %0 {offsets = [15, 0], sizes = [1, 32], strides = [1, 1]} : vector<18x128xf32> to vector<1x32xf32>
    %186 = vector.extract_strided_slice %0 {offsets = [16, 0], sizes = [1, 32], strides = [1, 1]} : vector<18x128xf32> to vector<1x32xf32>
    %187 = vector.extract_strided_slice %0 {offsets = [17, 0], sizes = [1, 32], strides = [1, 1]} : vector<18x128xf32> to vector<1x32xf32>
    %188 = arith.truncf %173 : vector<16x32xf32> to vector<16x32xbf16>
    %cst_47 = arith.constant dense<0.000000e+00> : vector<16x96xf32>
    %189 = tpu.matmul %188, %176, %cst_47 {dimension_numbers = #tpu.dot_dimension_numbers<[1], [0], [0], [1], [0, 0, 1, 1], [], []>} : vector<16x32xbf16>, vector<32x96xbf16>, vector<16x96xf32> -> vector<16x96xf32>
    %190 = vector.broadcast %180 : vector<1x96xf32> to vector<16x96xf32>
    %191 = arith.addf %189, %190 : vector<16x96xf32>
    %192 = arith.truncf %191 : vector<16x96xf32> to vector<16x96xbf16>
    %193 = vector.extract_strided_slice %191 {offsets = [0, 32], sizes = [16, 32], strides = [1, 1]} : vector<16x96xf32> to vector<16x32xf32>
    %194 = tpu.transpose %193, [1, 0] : vector<16x32xf32> -> vector<32x16xf32>
    %195 = arith.truncf %194 : vector<32x16xf32> to vector<32x16xbf16>
    %cst_48 = arith.constant 0.000000e+00 : f32
    %196 = vector.broadcast %cst_48 : f32 to vector<16x32xf32>
    %197 = vector.extract_strided_slice %192 {offsets = [0, 0], sizes = [16, 16], strides = [1, 1]} : vector<16x96xbf16> to vector<16x16xbf16>
    %198 = vector.extract_strided_slice %195 {offsets = [0, 0], sizes = [16, 16], strides = [1, 1]} : vector<32x16xbf16> to vector<16x16xbf16>
    %199 = vector.extract_strided_slice %192 {offsets = [0, 64], sizes = [16, 16], strides = [1, 1]} : vector<16x96xbf16> to vector<16x16xbf16>
    %cst_49 = arith.constant dense<0.000000e+00> : vector<16x16xf32>
    %200 = tpu.matmul %197, %198, %cst_49 {dimension_numbers = #tpu.dot_dimension_numbers<[1], [0], [0], [1], [0, 0, 1, 1], [], []>} : vector<16x16xbf16>, vector<16x16xbf16>, vector<16x16xf32> -> vector<16x16xf32>
    %201 = arith.addf %200, %14 : vector<16x16xf32>
    %cst_50 = arith.constant dense<0xFF800000> : vector<16xf32>
    %202 = vector.multi_reduction <maximumf>, %201, %cst_50 [1] : vector<16x16xf32> to vector<16xf32>
    %203 = vector.shape_cast %202 : vector<16xf32> to vector<16x1xf32>
    %204 = vector.broadcast %203 : vector<16x1xf32> to vector<16x16xf32>
    %205 = arith.subf %201, %204 : vector<16x16xf32>
    %206 = math.exp %205 : vector<16x16xf32>
    %cst_51 = arith.constant dense<0.000000e+00> : vector<16xf32>
    %207 = vector.multi_reduction <add>, %206, %cst_51 [1] : vector<16x16xf32> to vector<16xf32>
    %208 = vector.shape_cast %207 : vector<16xf32> to vector<16x1xf32>
    %209 = tpu.reciprocal %208 {approx = true} : vector<16x1xf32> -> vector<16x1xf32>
    %210 = vector.broadcast %209 : vector<16x1xf32> to vector<16x16xf32>
    %211 = arith.mulf %206, %210 : vector<16x16xf32>
    %212 = arith.truncf %211 : vector<16x16xf32> to vector<16x16xbf16>
    %cst_52 = arith.constant dense<0.000000e+00> : vector<16x16xf32>
    %213 = tpu.matmul %212, %199, %cst_52 {dimension_numbers = #tpu.dot_dimension_numbers<[1], [0], [0], [1], [0, 0, 1, 1], [], []>} : vector<16x16xbf16>, vector<16x16xbf16>, vector<16x16xf32> -> vector<16x16xf32>
    %214 = arith.truncf %213 : vector<16x16xf32> to vector<16x16xbf16>
    %215 = vector.extract_strided_slice %177 {offsets = [0, 0], sizes = [16, 32], strides = [1, 1]} : vector<32x32xbf16> to vector<16x32xbf16>
    %cst_53 = arith.constant dense<0.000000e+00> : vector<16x32xf32>
    %216 = tpu.matmul %214, %215, %cst_53 {dimension_numbers = #tpu.dot_dimension_numbers<[1], [0], [0], [1], [0, 0, 1, 1], [], []>} : vector<16x16xbf16>, vector<16x32xbf16>, vector<16x32xf32> -> vector<16x32xf32>
    %217 = arith.addf %196, %216 : vector<16x32xf32>
    %218 = vector.extract_strided_slice %192 {offsets = [0, 16], sizes = [16, 16], strides = [1, 1]} : vector<16x96xbf16> to vector<16x16xbf16>
    %219 = vector.extract_strided_slice %195 {offsets = [16, 0], sizes = [16, 16], strides = [1, 1]} : vector<32x16xbf16> to vector<16x16xbf16>
    %220 = vector.extract_strided_slice %192 {offsets = [0, 80], sizes = [16, 16], strides = [1, 1]} : vector<16x96xbf16> to vector<16x16xbf16>
    %cst_54 = arith.constant dense<0.000000e+00> : vector<16x16xf32>
    %221 = tpu.matmul %218, %219, %cst_54 {dimension_numbers = #tpu.dot_dimension_numbers<[1], [0], [0], [1], [0, 0, 1, 1], [], []>} : vector<16x16xbf16>, vector<16x16xbf16>, vector<16x16xf32> -> vector<16x16xf32>
    %222 = arith.addf %221, %14 : vector<16x16xf32>
    %cst_55 = arith.constant dense<0xFF800000> : vector<16xf32>
    %223 = vector.multi_reduction <maximumf>, %222, %cst_55 [1] : vector<16x16xf32> to vector<16xf32>
    %224 = vector.shape_cast %223 : vector<16xf32> to vector<16x1xf32>
    %225 = vector.broadcast %224 : vector<16x1xf32> to vector<16x16xf32>
    %226 = arith.subf %222, %225 : vector<16x16xf32>
    %227 = math.exp %226 : vector<16x16xf32>
    %cst_56 = arith.constant dense<0.000000e+00> : vector<16xf32>
    %228 = vector.multi_reduction <add>, %227, %cst_56 [1] : vector<16x16xf32> to vector<16xf32>
    %229 = vector.shape_cast %228 : vector<16xf32> to vector<16x1xf32>
    %230 = tpu.reciprocal %229 {approx = true} : vector<16x1xf32> -> vector<16x1xf32>
    %231 = vector.broadcast %230 : vector<16x1xf32> to vector<16x16xf32>
    %232 = arith.mulf %227, %231 : vector<16x16xf32>
    %233 = arith.truncf %232 : vector<16x16xf32> to vector<16x16xbf16>
    %cst_57 = arith.constant dense<0.000000e+00> : vector<16x16xf32>
    %234 = tpu.matmul %233, %220, %cst_57 {dimension_numbers = #tpu.dot_dimension_numbers<[1], [0], [0], [1], [0, 0, 1, 1], [], []>} : vector<16x16xbf16>, vector<16x16xbf16>, vector<16x16xf32> -> vector<16x16xf32>
    %235 = arith.truncf %234 : vector<16x16xf32> to vector<16x16xbf16>
    %236 = vector.extract_strided_slice %177 {offsets = [16, 0], sizes = [16, 32], strides = [1, 1]} : vector<32x32xbf16> to vector<16x32xbf16>
    %cst_58 = arith.constant dense<0.000000e+00> : vector<16x32xf32>
    %237 = tpu.matmul %235, %236, %cst_58 {dimension_numbers = #tpu.dot_dimension_numbers<[1], [0], [0], [1], [0, 0, 1, 1], [], []>} : vector<16x16xbf16>, vector<16x32xbf16>, vector<16x32xf32> -> vector<16x32xf32>
    %238 = arith.addf %217, %237 : vector<16x32xf32>
    %239 = vector.broadcast %181 : vector<1x32xf32> to vector<16x32xf32>
    %240 = arith.addf %238, %239 : vector<16x32xf32>
    %241 = arith.addf %240, %173 : vector<16x32xf32>
    %cst_59 = arith.constant dense<0.000000e+00> : vector<16xf32>
    %242 = vector.multi_reduction <add>, %241, %cst_59 [1] : vector<16x32xf32> to vector<16xf32>
    %243 = vector.shape_cast %242 : vector<16xf32> to vector<16x1xf32>
    %cst_60 = arith.constant 3.200000e+01 : f32
    %244 = vector.broadcast %cst_60 : f32 to vector<16x1xf32>
    %245 = arith.divf %243, %244 : vector<16x1xf32>
    %246 = vector.broadcast %245 : vector<16x1xf32> to vector<16x32xf32>
    %247 = arith.subf %241, %246 : vector<16x32xf32>
    %248 = arith.mulf %247, %247 : vector<16x32xf32>
    %cst_61 = arith.constant dense<0.000000e+00> : vector<16xf32>
    %249 = vector.multi_reduction <add>, %248, %cst_61 [1] : vector<16x32xf32> to vector<16xf32>
    %250 = vector.shape_cast %249 : vector<16xf32> to vector<16x1xf32>
    %cst_62 = arith.constant 3.200000e+01 : f32
    %251 = vector.broadcast %cst_62 : f32 to vector<16x1xf32>
    %252 = arith.divf %250, %251 : vector<16x1xf32>
    %253 = vector.broadcast %245 : vector<16x1xf32> to vector<16x32xf32>
    %254 = arith.subf %241, %253 : vector<16x32xf32>
    %cst_63 = arith.constant 9.99999996E-13 : f32
    %255 = vector.broadcast %cst_63 : f32 to vector<16x1xf32>
    %256 = arith.addf %252, %255 : vector<16x1xf32>
    %257 = math.rsqrt %256 : vector<16x1xf32>
    %258 = vector.broadcast %257 : vector<16x1xf32> to vector<16x32xf32>
    %259 = arith.mulf %254, %258 : vector<16x32xf32>
    %260 = vector.broadcast %182 : vector<1x32xf32> to vector<16x32xf32>
    %261 = arith.mulf %259, %260 : vector<16x32xf32>
    %262 = vector.broadcast %183 : vector<1x32xf32> to vector<16x32xf32>
    %263 = arith.addf %261, %262 : vector<16x32xf32>
    %264 = arith.truncf %263 : vector<16x32xf32> to vector<16x32xbf16>
    %cst_64 = arith.constant dense<0.000000e+00> : vector<16x64xf32>
    %265 = tpu.matmul %264, %178, %cst_64 {dimension_numbers = #tpu.dot_dimension_numbers<[1], [0], [0], [1], [0, 0, 1, 1], [], []>} : vector<16x32xbf16>, vector<32x64xbf16>, vector<16x64xf32> -> vector<16x64xf32>
    %266 = vector.broadcast %184 : vector<1x64xf32> to vector<16x64xf32>
    %267 = arith.addf %265, %266 : vector<16x64xf32>
    %cst_65 = arith.constant 5.000000e-01 : f32
    %268 = vector.broadcast %cst_65 : f32 to vector<16x64xf32>
    %269 = arith.mulf %268, %267 : vector<16x64xf32>
    %cst_66 = arith.constant 4.471500e-02 : f32
    %270 = vector.broadcast %cst_66 : f32 to vector<16x64xf32>
    %271 = arith.mulf %270, %267 : vector<16x64xf32>
    %272 = arith.mulf %271, %267 : vector<16x64xf32>
    %273 = arith.mulf %272, %267 : vector<16x64xf32>
    %274 = arith.addf %267, %273 : vector<16x64xf32>
    %cst_67 = arith.constant 0.797884583 : f32
    %275 = vector.broadcast %cst_67 : f32 to vector<16x64xf32>
    %276 = arith.mulf %275, %274 : vector<16x64xf32>
    %277 = math.tanh %276 : vector<16x64xf32>
    %cst_68 = arith.constant 1.000000e+00 : f32
    %278 = vector.broadcast %cst_68 : f32 to vector<16x64xf32>
    %279 = arith.addf %278, %277 : vector<16x64xf32>
    %280 = arith.mulf %269, %279 : vector<16x64xf32>
    %281 = arith.truncf %280 : vector<16x64xf32> to vector<16x64xbf16>
    %cst_69 = arith.constant dense<0.000000e+00> : vector<16x32xf32>
    %282 = tpu.matmul %281, %179, %cst_69 {dimension_numbers = #tpu.dot_dimension_numbers<[1], [0], [0], [1], [0, 0, 1, 1], [], []>} : vector<16x64xbf16>, vector<64x32xbf16>, vector<16x32xf32> -> vector<16x32xf32>
    %283 = vector.broadcast %185 : vector<1x32xf32> to vector<16x32xf32>
    %284 = arith.addf %282, %283 : vector<16x32xf32>
    %285 = arith.addf %284, %263 : vector<16x32xf32>
    %cst_70 = arith.constant dense<0.000000e+00> : vector<16xf32>
    %286 = vector.multi_reduction <add>, %285, %cst_70 [1] : vector<16x32xf32> to vector<16xf32>
    %287 = vector.shape_cast %286 : vector<16xf32> to vector<16x1xf32>
    %cst_71 = arith.constant 3.200000e+01 : f32
    %288 = vector.broadcast %cst_71 : f32 to vector<16x1xf32>
    %289 = arith.divf %287, %288 : vector<16x1xf32>
    %290 = vector.broadcast %289 : vector<16x1xf32> to vector<16x32xf32>
    %291 = arith.subf %285, %290 : vector<16x32xf32>
    %292 = arith.mulf %291, %291 : vector<16x32xf32>
    %cst_72 = arith.constant dense<0.000000e+00> : vector<16xf32>
    %293 = vector.multi_reduction <add>, %292, %cst_72 [1] : vector<16x32xf32> to vector<16xf32>
    %294 = vector.shape_cast %293 : vector<16xf32> to vector<16x1xf32>
    %cst_73 = arith.constant 3.200000e+01 : f32
    %295 = vector.broadcast %cst_73 : f32 to vector<16x1xf32>
    %296 = arith.divf %294, %295 : vector<16x1xf32>
    %297 = vector.broadcast %289 : vector<16x1xf32> to vector<16x32xf32>
    %298 = arith.subf %285, %297 : vector<16x32xf32>
    %cst_74 = arith.constant 9.99999996E-13 : f32
    %299 = vector.broadcast %cst_74 : f32 to vector<16x1xf32>
    %300 = arith.addf %296, %299 : vector<16x1xf32>
    %301 = math.rsqrt %300 : vector<16x1xf32>
    %302 = vector.broadcast %301 : vector<16x1xf32> to vector<16x32xf32>
    %303 = arith.mulf %298, %302 : vector<16x32xf32>
    %304 = vector.broadcast %186 : vector<1x32xf32> to vector<16x32xf32>
    %305 = arith.mulf %303, %304 : vector<16x32xf32>
    %306 = vector.broadcast %187 : vector<1x32xf32> to vector<16x32xf32>
    %307 = arith.addf %305, %306 : vector<16x32xf32>
    %c0_75 = arith.constant 0 : index
    %c0_76 = arith.constant 0 : index
    %308 = vector.load %arg5[%c0_75, %c0_76] : memref<16x32xf32, #tpu.memory_space<vmem>>, vector<16x32xf32>
    tpu.vector_store %arg5[%c0_75, %c0_76], %307 {strides = array<i32>} : memref<16x32xf32, #tpu.memory_space<vmem>>, vector<16x32xf32>,
    return
  }
}

</mosaic_0001>

<bundles_post_ra>
// kernel: _lambda_.1
= control target key start
LH: loop header
LB: loop body
LE: loop exit
PB: predicated region body
PF: predicated region fallthrough
CT: control target
= control target key end

     0   :  { %vm57_vm0 = vcmask 261120   ;;  %s2191_s0 = inlined_call_operand.vmem [shape: f32[16,32], index: 0, kind: input, shape index: {}]   ;;  %s2192_s1 = inlined_call_operand.vmem [shape: f32[2,16], index: 1, kind: input, shape index: {}]   ;;  %s2193_s2 = inlined_call_operand.vmem [shape: f32[16,1], index: 2, kind: input, shape index: {}]   ;;  %s2194_s3 = inlined_call_operand.vmem [shape: bf16[2,96,256], index: 3, kind: input, shape index: {}]   ;;  %s2195_s4 = inlined_call_operand.vmem [shape: f32[18,128], index: 4, kind: input, shape index: {}]   ;;  %s2196_s5 = inlined_call_operand.hbm [shape: f32[16,32], index: 5, kind: output, shape index: {}]  }
   0x1   :  { %v55_v0 = vld [vmem:[%s2191_s0] sm:$0xff]  ;;  %v56_v1 = vld [vmem:[%s2191_s0 + $0x8] sm:$0xff] }
   0x2   :  { %v58_v2 = vsel %vm57_vm0, %v55_v0, 0.0  ;;  %v61_v3 = vsel %vm57_vm0, %v56_v1, 0.0 }
   0x3   :  { %59 = vadd.xlane.f32.xlu0 %v58_v2 }
   0x7   :  { %62 = vadd.xlane.f32.xlu0 %v61_v3 }
   0x8   :  { %10 = vsyncpa [#allocation3], 0  ;;  %v1864_v14 = vld [vmem:[%s2194_s3] ss:$8 sps:$4 sm:$0xff]   ;;  %v1809_v15 = vmov 0.0   ;;  %vm1810_vm1 = vmmov 0   ;;  %v39_v21 = vlaneseq }
   0x9   :  { %1564 = vmatprep.subr.bf16.mxu0 %v1809_v15  ;;  %1578 = vmatprep.subr.bf16.mxu1 %v1809_v15  ;;  %v1872_v16 = vld [vmem:[%s2194_s3 + $0x10] ss:$8 sps:$4 sm:$0xff]   ;;  %v1889_v26 = vld [vmem:[%s2195_s4] sm:$0xff]  ;;  %s1811_s27 = smov 96   ;;  %s1812_s28 = smov 112   ;;  %v1813_v51 = vmov 0  }
   0xa   :  { %1565 = vmatpush3.bf16.msra.mxu0 %v1864_v14  ;;  %1568 = vmatprep.mubr.msk.bf16.mxu0 %vm1810_vm1, %v1809_v15  ;;  %v1881_v24 = vshrl.u32 %v39_v21, 7  ;;  %v27_v50 = vld [vmem:[%s2193_s2] sm:$0xff]  ;;  %v28_v52 = vld [vmem:[%s2193_s2 + $0x8] sm:$0xff]  ;;  %vm213_vm2 = vcmask 130048   ;;  %v1814_v2 = vmov -1e+09  }
   0xb   :  { %1566 = vmatprep.subr.bf16.mxu0 %v1809_v15  ;;  %1580 = vmatprep.mubr.msk.bf16.mxu1 %vm1810_vm1, %v1809_v15  ;;  %v25_v60 = vld [vmem:[%s2192_s1] sm:$0x3]  ;;  %s1815_s1 = smov 64   ;;  %s1816_s9 = smov 48   ;;  %vm691_vm9 = vcmask 523264  }
   0xc   :  { %v1884_v25 = vsub.s32 0, %v1881_v24  ;;  %v1892_v29 = vsub.s32 1, %v1881_v24  ;;  %v112_v39 = vsub.s32 2, %v1881_v24  ;;  %1704 = vset.pattern.permute.xlu0 %v1813_v51  ;;  %vm26_vm3 = vcmp.gt.f32.partialorder %v25_v60, 0.5  ;;  %s1817_s10 = smov 32   ;;  %s1818_s14 = smov [#allocation2]  }
   0xd   :  { %v45_v61 = vsel %vm26_vm3, 1, %v1813_v51  ;;  %s1461_s15 = sshll.u32 %s1818_s14, 4  ;;  %s1462_s15 = int_to_ptr.vmem [resolvable:$true] %s1461_s15 }
   0xe   :  { %1567 = vmatpush3.bf16.msra.mxu0 %v1872_v16  ;;  %v88_v30 = vrot.slane %v1889_v26, %v1884_v25  ;;  %v94_v34 = vrot.slane %v1889_v26, %v1892_v29  ;;  %v113_v40 = vrot.slane %v1889_v26, %v112_v39  ;;  %v49_v63 = vrot.slane %v45_v61, %v1884_v25  ;;  %p1790_p1 = scmp.lt.s32.totalorder %s1462_s15, %s1462_s15 }
   0xf   :  { %1572 = vmatprep.subr.bf16.mxu0 %v1809_v15 }
  0x10   :  { %vm50_vm4 = vcmp.eq.s32.totalorder %v49_v63, 1 }
  0x90   :  { %v60_v4 = vpop.xlane.xlu0 %59 }
  0x91   :  { %v65_v5 = vmul.f32 0.03125, %v60_v4 }
  0x93   :  { %v67_v6 = vsub.f32 %v55_v0, %v65_v5  ;;  %v42_v0 = vrot.slane %v25_v60, %v1892_v29 }
  0x94   :  { %v63_v7 = vpop.xlane.xlu0 %62 }
  0x95   :  { %v66_v8 = vmul.f32 0.03125, %v63_v7  ;;  %v69_v9 = vmul.f32 %v67_v6, %v67_v6 }
  0x97   :  { %v68_v10 = vsub.f32 %v56_v1, %v66_v8  ;;  %v71_v11 = vsel %vm57_vm0, %v69_v9, 0.0 }
  0x98   :  { %72 = vadd.xlane.f32.xlu1 %v71_v11 }
  0x99   :  { %v70_v12 = vmul.f32 %v68_v10, %v68_v10 }
  0x9b   :  { %v74_v13 = vsel %vm57_vm0, %v70_v12, 0.0 }
  0x9c   :  { %75 = vadd.xlane.f32.xlu1 %v74_v13 }
 0x125   :  { %v73_v17 = vpop.xlane.xlu1 %72 }
 0x126   :  { %v77_v18 = vmul.f32 0.03125, %v73_v17 }
 0x128   :  { %v79_v19 = vadd.f32 1e-12, %v77_v18 }
 0x129   :  { %v76_v20 = vpop.xlane.xlu1 %75 }
 0x12a   :  { %1725 = vrsqrt.f32 %v79_v19  ;;  %v78_v22 = vmul.f32 0.03125, %v76_v20 }
 0x12c   :  { %v80_v23 = vadd.f32 1e-12, %v78_v22 }
 0x12e   :  { %1727 = vrsqrt.f32 %v80_v23 }
 0x134   :  { %v1726_v27 = vpop.eup %1725 }
 0x135   :  { %v83_v28 = vmul.f32 %v1726_v27, %v67_v6 }
 0x137   :  { %v89_v33 = vmul.f32 %v88_v30, %v83_v28 }
 0x138   :  { %v1728_v31 = vpop.eup %1727 }
 0x139   :  { %v84_v32 = vmul.f32 %v1728_v31, %v68_v10  ;;  %v1898_v36 = vadd.f32 %v94_v34, %v89_v33 }
 0x13b   :  { %v90_v35 = vmul.f32 %v88_v30, %v84_v32 }
 0x13d   :  { %v1900_v37 = vadd.f32 %v94_v34, %v90_v35 }
 0x13f   :  { %v109_v38 = vpack.c.bf16 %v1900_v37, %v1898_v36 }
 0x141   :  { %1569 = vmatmul.mubr.msk.bf16.vlgmr.msra.gmra.mrb[0].mxu0 %vm57_vm0, %v109_v38 }
 0x142   :  { %1574 = vmatprep.mubr.msk.bf16.mxu0 %vm1810_vm1, %v1809_v15 }
 0x214   :  { %v163_v41 = vpop.f32.mrb[0].mxu0 }
 0x215   :  { %v164_v42 = vadd.f32 %v163_v41, %v113_v40  ;;  %v1570_v43 = vpop.f32.mrb[1].mxu0 }
 0x216   :  { %v166_v44 = vpop.f32.mrb[2].mxu0 }
 0x217   :  { %v167_v45 = vadd.f32 %v166_v44, %v113_v40  ;;  %173 = vrot.lane.b32.xlu0 %v164_v42, %s1811_s27  ;;  %v1571_v46 = vpop.f32.mrb[3].mxu0 }
 0x219   :  { %v1912_v47 = vpack.c.bf16 %v167_v45, %v164_v42  ;;  %175 = vrot.lane.b32.xlu1 %v167_v45, %s1811_s27 }
 0x21b   :  { %31 = vperm.xlu0 %1704, %v27_v50  }
 0x21d   :  { %330 = vrot.lane.b32.xlu1 %v1912_v47, %s1812_s28 }
 0x21f   :  { %36 = vperm.xlu0 %1704, %v28_v52  }
 0x289   :  { %v174_v48 = vpop.permute.xlu0 %173 }
 0x28a   :  { %179 = vxpose.xlu1.b32.start [1/2] (short) (narrow) %v174_v48, 32 }
 0x28b   :  { %v176_v49 = vpop.permute.xlu1 %175 }
 0x28e   :  { %180 = vxpose.xlu1.b32.end [2/2] (short) (narrow) %v176_v49, 32 }
 0x28f   :  { %v331_v53 = vpop.permute.xlu1 %330 }
 0x29a   :  { %v32_v62 = vpop.permute.xlu0 %31 }
 0x29b   :  { %vm43_vm5 = vcmp.eq.f32.partialorder %v32_v62, %v42_v0 }
 0x29c   :  { %vm51_vm6 = vmand %vm43_vm5, %vm50_vm4 }
 0x29d   :  { %v1937_v3 = vsel %vm51_vm6, 0.0, %v1814_v2 }
 0x29e   :  { %v37_v1 = vpop.permute.xlu0 %36 }
 0x29f   :  { %vm44_vm7 = vcmp.eq.f32.partialorder %v37_v1, %v42_v0 }
 0x2a0   :  { %vm52_vm8 = vmand %vm44_vm7, %vm50_vm4 }
 0x2a1   :  { %v1940_v7 = vsel %vm52_vm8, 0.0, %v1814_v2 }
 0x30a   :  { %v195_v54 = vpop.trf.xlu1 }
 0x30e   :  { %v196_v55 = vpop.trf.xlu1 }
 0x30f   :  { %v211_v56 = vpack.c.bf16 %v196_v55, %v195_v54 }
 0x311   :  { %1573 = vmatpush3.bf16.msra.mxu0 %v211_v56 }
 0x312   :  { %v197_v57 = vpop.trf.xlu1  ;;  %1584 = vmatprep.subr.bf16.mxu0 %v1809_v15 }
 0x314   :  { %1575 = vmatmul.mubr.msk.bf16.vlgmr.msra.gmra.mrb[4].mxu0 %vm213_vm2, %v1912_v47 }
 0x315   :  { %1586 = vmatprep.mubr.msk.bf16.mxu0 %vm1810_vm1, %v1809_v15 }
 0x316   :  { %v198_v58 = vpop.trf.xlu1 }
 0x317   :  { %v212_v59 = vpack.c.bf16 %v198_v58, %v197_v57 }
 0x319   :  { %1585 = vmatpush3.bf16.msra.mxu0 %v212_v59 }
 0x31a   :  { %1596 = vmatprep.subr.bf16.mxu0 %v1809_v15 }
 0x31c   :  { %1587 = vmatmul.mubr.msk.bf16.vlgmr.msra.gmra.mrb[8].mxu0 %vm213_vm2, %v331_v53 }
 0x31d   :  { %1598 = vmatprep.mubr.msk.bf16.mxu0 %vm1810_vm1, %v1809_v15 }
 0x3e7   :  { %v251_v4 = vpop.f32.mrb[4].mxu0 }
 0x3e8   :  { %v252_v5 = vadd.f32 %v251_v4, %v1937_v3  ;;  %v1576_v6 = vpop.f32.mrb[5].mxu0 }
 0x3e9   :  { %v254_v8 = vpop.f32.mrb[6].mxu0 }
 0x3ea   :  { %v255_v9 = vadd.f32 %v254_v8, %v1940_v7  ;;  %v1577_v10 = vpop.f32.mrb[7].mxu0  ;;  %v258_v11 = vsel %vm213_vm2, %v252_v5, -inf }
 0x3eb   :  { %259 = vmax.xlane.f32.xlu0 %v258_v11 }
 0x3ec   :  { %v261_v12 = vsel %vm213_vm2, %v255_v9, -inf }
 0x3ef   :  { %262 = vmax.xlane.f32.xlu0 %v261_v12  ;;  %v369_v13 = vpop.f32.mrb[8].mxu0  ;;  %v1707_v12 = vld [vmem:[%s2194_s3 + $0x4] ss:$8 sps:$4 sm:$0xff]  }
 0x3f0   :  { %v370_v17 = vadd.f32 %v369_v13, %v1937_v3  ;;  %v1588_v18 = vpop.f32.mrb[9].mxu0 }
 0x3f1   :  { %v372_v19 = vpop.f32.mrb[10].mxu0 }
 0x3f2   :  { %v373_v20 = vadd.f32 %v372_v19, %v1940_v7  ;;  %v1589_v21 = vpop.f32.mrb[11].mxu0  ;;  %v376_v22 = vsel %vm213_vm2, %v370_v17, -inf  ;;  %v1710_v19 = vld [vmem:[%s2194_s3 + $0x14] ss:$8 sps:$4 sm:$0xff]  }
 0x3f3   :  { %377 = vmax.xlane.f32.xlu1 %v376_v22 }
 0x3f4   :  { %v379_v23 = vsel %vm213_vm2, %v373_v20, -inf }
 0x3f5   :  { %380 = vmax.xlane.f32.xlu0 %v379_v23 }
 0x404   :  { %447 = vrot.lane.b32.xlu1 %v1872_v16, %s1817_s10 }
 0x40b   :  { %282 = vrot.lane.b32.xlu0 %v1912_v47, %s1815_s1 }
 0x478   :  { %v260_v27 = vpop.xlane.xlu0 %259 }
 0x479   :  { %v264_v28 = vsub.f32 %v252_v5, %v260_v27  ;;  %v543_v27 = vsub.s32 3, %v1881_v24 }
 0x47b   :  { %v266_v30 = vmul.f32 1.442695, %v264_v28  ;;  %v544_v28 = vrot.slane %v1889_v26, %v543_v27 }
 0x47c   :  { %v263_v31 = vpop.xlane.xlu0 %262 }
 0x47d   :  { %1729 = vpow2.f32 %v266_v30  ;;  %v265_v32 = vsub.f32 %v255_v9, %v263_v31 }
 0x47f   :  { %v268_v33 = vmul.f32 1.442695, %v265_v32 }
 0x480   :  { %v378_v34 = vpop.xlane.xlu1 %377 }
 0x481   :  { %1731 = vpow2.f32 %v268_v33  ;;  %v382_v35 = vsub.f32 %v370_v17, %v378_v34 }
 0x482   :  { %v381_v38 = vpop.xlane.xlu0 %380 }
 0x483   :  { %v384_v40 = vmul.f32 1.442695, %v382_v35  ;;  %v383_v41 = vsub.f32 %v373_v20, %v381_v38 }
 0x484   :  { %v448_v2 = vpop.permute.xlu1 %447 }
 0x485   :  { %1733 = vpow2.f32 %v384_v40  ;;  %v386_v42 = vmul.f32 1.442695, %v383_v41  ;;  %1597 = vmatpush3.bf16.msra.mxu0 %v448_v2 }
 0x486   :  { %v283_v43 = vpop.permute.xlu0 %282  ;;  %1608 = vmatprep.subr.bf16.mxu0 %v1809_v15 }
 0x487   :  { %v1730_v44 = vpop.eup %1729  ;;  %1735 = vpow2.f32 %v386_v42  ;;  %1579 = vmatpush3.bf16.msra.mxu1 %v283_v43 }
 0x488   :  { %v270_v45 = vsel %vm213_vm2, %v1730_v44, 0.0  ;;  %1590 = vmatprep.subr.bf16.mxu1 %v1809_v15 }
 0x489   :  { %271 = vadd.xlane.f32.xlu0 %v270_v45 }
 0x48b   :  { %v1732_v46 = vpop.eup %1731 }
 0x48c   :  { %v273_v48 = vsel %vm213_vm2, %v1732_v46, 0.0 }
 0x48d   :  { %274 = vadd.xlane.f32.xlu0 %v273_v48 }
 0x48f   :  { %v1734_v49 = vpop.eup %1733 }
 0x490   :  { %v388_v50 = vsel %vm213_vm2, %v1734_v49, 0.0 }
 0x491   :  { %v1736_v51 = vpop.eup %1735  ;;  %389 = vadd.xlane.f32.xlu0 %v388_v50 }
 0x492   :  { %v391_v52 = vsel %vm213_vm2, %v1736_v51, 0.0 }
 0x495   :  { %392 = vadd.xlane.f32.xlu0 %v391_v52 }
 0x4ab   :  { %399 = vrot.lane.b32.xlu0 %v1912_v47, %s1816_s9 }
 0x4af   :  { %494 = vrot.lane.b32.xlu0 %v1864_v14, %s1817_s10 }
 0x516   :  { %v272_v53 = vpop.xlane.xlu0 %271 }
 0x517   :  { %1737 = vrcp.f32 %v272_v53 }
 0x51a   :  { %v275_v54 = vpop.xlane.xlu0 %274 }
 0x51b   :  { %1739 = vrcp.f32 %v275_v54 }
 0x51e   :  { %v390_v55 = vpop.xlane.xlu0 %389 }
 0x51f   :  { %1741 = vrcp.f32 %v390_v55 }
 0x521   :  { %v1738_v57 = vpop.eup %1737 }
 0x522   :  { %v393_v56 = vpop.xlane.xlu0 %392  ;;  %v278_v59 = vmul.f32 %v1738_v57, %v1730_v44 }
 0x523   :  { %1743 = vrcp.f32 %v393_v56 }
 0x525   :  { %v1740_v58 = vpop.eup %1739 }
 0x526   :  { %v279_v60 = vmul.f32 %v1740_v58, %v1732_v46  ;;  %v400_v61 = vpop.permute.xlu0 %399 }
 0x528   :  { %v280_v47 = vpack.c.bf16 %v279_v60, %v278_v59  ;;  %v577_v60 = vsub.s32 4, %v1881_v24 }
 0x529   :  { %v1742_v14 = vpop.eup %1741 }
 0x52a   :  { %1581 = vmatmul.mubr.msk.bf16.vlgmr.msra.gmra.mrb[0].mxu1 %vm213_vm2, %v280_v47  ;;  %v396_v62 = vmul.f32 %v1742_v14, %v1734_v49  ;;  %v495_v1 = vpop.permute.xlu0 %494 }
 0x52b   :  { %1591 = vmatpush3.bf16.msra.mxu1 %v400_v61  ;;  %1592 = vmatprep.mubr.msk.bf16.mxu1 %vm1810_vm1, %v1809_v15  ;;  %v578_v61 = vrot.slane %v1889_v26, %v577_v60 }
 0x52c   :  { %1602 = vmatprep.subr.bf16.mxu1 %v1809_v15 }
 0x52d   :  { %v1744_v16 = vpop.eup %1743 }
 0x52e   :  { %v397_v63 = vmul.f32 %v1744_v16, %v1736_v51  ;;  %v583_v16 = vsub.s32 5, %v1881_v24 }
 0x530   :  { %v398_v0 = vpack.c.bf16 %v397_v63, %v396_v62 }
 0x532   :  { %1593 = vmatmul.mubr.msk.bf16.vlgmr.msra.gmra.mrb[4].mxu1 %vm213_vm2, %v398_v0 }
 0x533   :  { %1604 = vmatprep.mubr.msk.bf16.mxu1 %vm1810_vm1, %v1809_v15  ;;  %1603 = vmatpush3.bf16.msra.mxu1 %v495_v1  ;;  %v584_v1 = vrot.slane %v1889_v26, %v583_v16 }
 0x534   :  { %1616 = vmatprep.subr.bf16.mxu1 %v1809_v15 }
 0x5fd   :  { %v322_v4 = vpop.f32.mrb[0].mxu1 }
 0x5fe   :  { %v1582_v5 = vpop.f32.mrb[1].mxu1 }
 0x5ff   :  { %v325_v6 = vpop.f32.mrb[2].mxu1 }
 0x600   :  { %v329_v8 = vpack.c.bf16 %v325_v6, %v322_v4  ;;  %v1583_v9 = vpop.f32.mrb[3].mxu1 }
 0x601   :  { %v1712_v9 = vld [vmem:[%s2194_s3 + $0x30] ss:$8 sps:$4 sm:$0xff]  }
 0x602   :  { %1605 = vmatmul.mubr.msk.bf16.vlgmr.msra.gmra.mrb[8].mxu1 %vm213_vm2, %v329_v8  ;;  %v1711_v8 = vld [vmem:[%s2194_s3 + $0x20] ss:$8 sps:$4 sm:$0xff]  }
 0x603   :  { %1624 = vmatprep.mubr.msk.bf16.mxu1 %vm1810_vm1, %v1809_v15  ;;  %1617 = vmatpush3.bf16.msra.mxu1 %v1711_v8  ;;  %v2046_v8 = vld [vmem:[%s2194_s3 + $0x70] ss:$8 sps:$4 sm:$0xff]  }
 0x604   :  { %1618 = vmatprep.subr.bf16.mxu1 %v1809_v15 }
 0x605   :  { %v439_v10 = vpop.f32.mrb[4].mxu1 }
 0x606   :  { %v1594_v11 = vpop.f32.mrb[5].mxu1 }
 0x607   :  { %v442_v13 = vpop.f32.mrb[6].mxu1  ;;  %1619 = vmatpush3.bf16.msra.mxu1 %v1712_v9  ;;  %v1714_v11 = vld [vmem:[%s2194_s3 + $0x50] ss:$8 sps:$4 sm:$0xff]  }
 0x608   :  { %v446_v17 = vpack.c.bf16 %v442_v13, %v439_v10  ;;  %v1595_v18 = vpop.f32.mrb[7].mxu1  ;;  %v1713_v10 = vld [vmem:[%s2194_s3 + $0x40] ss:$8 sps:$4 sm:$0xff]   ;;  %1620 = vmatprep.subr.bf16.mxu1 %v1809_v15 }
 0x60a   :  { %1599 = vmatmul.mubr.msk.bf16.vlgmr.msra.gmra.mrb[12].mxu0 %vm213_vm2, %v446_v17 }
 0x60b   :  { %1609 = vmatpush3.bf16.msra.mxu0 %v1707_v12  ;;  %1612 = vmatprep.mubr.msk.bf16.mxu0 %vm1810_vm1, %v1809_v15  ;;  %v590_v12 = vsub.s32 6, %v1881_v24 }
 0x60c   :  { %1610 = vmatprep.subr.bf16.mxu0 %v1809_v15  ;;  %1621 = vmatpush3.bf16.msra.mxu1 %v1713_v10 }
 0x60d   :  { %1622 = vmatprep.subr.bf16.mxu1 %v1809_v15  ;;  %v591_v13 = vrot.slane %v1889_v26, %v590_v12 }
 0x60f   :  { %1611 = vmatpush3.bf16.msra.mxu0 %v1710_v19 }
 0x610   :  { %1628 = vmatprep.subr.bf16.mxu0 %v1809_v15  ;;  %1623 = vmatpush3.bf16.msra.mxu1 %v1714_v11 }
 0x611   :  { %1642 = vmatprep.subr.bf16.mxu1 %v1809_v15 }
 0x6d5   :  { %v534_v20 = vpop.f32.mrb[8].mxu1 }
 0x6d6   :  { %v1606_v21 = vpop.f32.mrb[9].mxu1 }
 0x6d7   :  { %v537_v22 = vpop.f32.mrb[10].mxu1 }
 0x6d8   :  { %v1607_v23 = vpop.f32.mrb[11].mxu1 }
 0x6dd   :  { %v487_v30 = vpop.f32.mrb[12].mxu0 }
 0x6de   :  { %v535_v31 = vadd.f32 %v534_v20, %v487_v30  ;;  %v1600_v32 = vpop.f32.mrb[13].mxu0 }
 0x6df   :  { %v490_v33 = vpop.f32.mrb[14].mxu0 }
 0x6e0   :  { %v545_v34 = vadd.f32 %v544_v28, %v535_v31  ;;  %v538_v35 = vadd.f32 %v537_v22, %v490_v33  ;;  %v1601_v38 = vpop.f32.mrb[15].mxu0 }
 0x6e2   :  { %v546_v40 = vadd.f32 %v544_v28, %v538_v35  ;;  %v547_v41 = vadd.f32 %v545_v34, %v1898_v36 }
 0x6e4   :  { %v549_v42 = vsel %vm57_vm0, %v547_v41, 0.0  ;;  %v548_v43 = vadd.f32 %v546_v40, %v1900_v37 }
 0x6e5   :  { %550 = vadd.xlane.f32.xlu0 %v549_v42 }
 0x6e6   :  { %v552_v44 = vsel %vm57_vm0, %v548_v43, 0.0 }
 0x6e7   :  { %553 = vadd.xlane.f32.xlu1 %v552_v44 }
 0x772   :  { %v551_v45 = vpop.xlane.xlu0 %550 }
 0x773   :  { %v555_v46 = vmul.f32 0.03125, %v551_v45 }
 0x774   :  { %v554_v48 = vpop.xlane.xlu1 %553 }
 0x775   :  { %v557_v49 = vsub.f32 %v547_v41, %v555_v46  ;;  %v556_v50 = vmul.f32 0.03125, %v554_v48 }
 0x777   :  { %v558_v51 = vsub.f32 %v548_v43, %v556_v50  ;;  %v559_v52 = vmul.f32 %v557_v49, %v557_v49 }
 0x779   :  { %v561_v53 = vsel %vm57_vm0, %v559_v52, 0.0  ;;  %v560_v54 = vmul.f32 %v558_v51, %v558_v51 }
 0x77a   :  { %562 = vadd.xlane.f32.xlu0 %v561_v53 }
 0x77b   :  { %v564_v36 = vsel %vm57_vm0, %v560_v54, 0.0 }
 0x77e   :  { %565 = vadd.xlane.f32.xlu0 %v564_v36 }
 0x807   :  { %v563_v55 = vpop.xlane.xlu0 %562 }
 0x808   :  { %v567_v37 = vmul.f32 0.03125, %v563_v55 }
 0x80a   :  { %v569_v56 = vadd.f32 1e-12, %v567_v37 }
 0x80b   :  { %v566_v57 = vpop.xlane.xlu0 %565 }
 0x80c   :  { %1745 = vrsqrt.f32 %v569_v56  ;;  %v568_v58 = vmul.f32 0.03125, %v566_v57 }
 0x80e   :  { %v570_v59 = vadd.f32 1e-12, %v568_v58 }
 0x810   :  { %1747 = vrsqrt.f32 %v570_v59 }
 0x816   :  { %v1746_v47 = vpop.eup %1745 }
 0x817   :  { %v573_v14 = vmul.f32 %v1746_v47, %v557_v49 }
 0x819   :  { %v579_v63 = vmul.f32 %v578_v61, %v573_v14 }
 0x81a   :  { %v1748_v62 = vpop.eup %1747 }
 0x81b   :  { %v574_v0 = vmul.f32 %v1748_v62, %v558_v51  ;;  %v585_v4 = vadd.f32 %v584_v1, %v579_v63  ;;  %v665_v51 = vsub.s32 7, %v1881_v24 }
 0x81d   :  { %v580_v2 = vmul.f32 %v578_v61, %v574_v0  ;;  %v666_v52 = vrot.slane %v1889_v26, %v665_v51 }
 0x81f   :  { %v586_v5 = vadd.f32 %v584_v1, %v580_v2 }
 0x821   :  { %v587_v6 = vpack.c.bf16 %v586_v5, %v585_v4 }
 0x823   :  { %1613 = vmatmul.mubr.msk.bf16.vlgmr.msra.gmra.mrb[16].mxu0 %vm57_vm0, %v587_v6 }
 0x824   :  { %1632 = vmatprep.mubr.msk.bf16.mxu0 %vm1810_vm1, %v1809_v15 }
 0x8f6   :  { %v637_v17 = vpop.f32.mrb[16].mxu0 }
 0x8f7   :  { %v638_v18 = vadd.f32 %v637_v17, %v591_v13  ;;  %v1614_v19 = vpop.f32.mrb[17].mxu0 }
 0x8f8   :  { %v640_v20 = vpop.f32.mrb[18].mxu0  ;;  %v2054_v19 = vld [vmem:[%s2195_s4 + $0x8] sm:$0xff] }
 0x8f9   :  { %v646_v21 = vmul.f32 0.044715, %v638_v18  ;;  %v641_v22 = vadd.f32 %v640_v20, %v591_v13  ;;  %v1615_v23 = vpop.f32.mrb[19].mxu0  ;;  %v644_v44 = vmul.f32 0.5, %v638_v18 }
 0x8fb   :  { %v648_v28 = vmul.f32 %v646_v21, %v638_v18  ;;  %v647_v30 = vmul.f32 0.044715, %v641_v22  ;;  %v645_v45 = vmul.f32 0.5, %v641_v22  ;;  %v767_v21 = vrot.slane %v2054_v19, %v1884_v25 }
 0x8fd   :  { %v650_v31 = vmul.f32 %v648_v28, %v638_v18  ;;  %v649_v32 = vmul.f32 %v647_v30, %v641_v22 }
 0x8ff   :  { %v652_v33 = vadd.f32 %v650_v31, %v638_v18  ;;  %v651_v34 = vmul.f32 %v649_v32, %v641_v22  ;;  %v773_v31 = vrot.slane %v2054_v19, %v1892_v29 }
 0x901   :  { %v654_v35 = vmul.f32 0.7978846, %v652_v33  ;;  %v653_v38 = vadd.f32 %v651_v34, %v641_v22 }
 0x903   :  { %1749 = vtanh.f32 %v654_v35  ;;  %v655_v40 = vmul.f32 0.7978846, %v653_v38  ;;  %v793_v38 = vrot.slane %v2054_v19, %v112_v39 }
 0x905   :  { %1751 = vtanh.f32 %v655_v40 }
 0x90d   :  { %v1750_v41 = vpop.eup %1749 }
 0x90e   :  { %v658_v42 = vadd.f32 1.0, %v1750_v41 }
 0x90f   :  { %v1752_v43 = vpop.eup %1751 }
 0x910   :  { %v659_v46 = vadd.f32 1.0, %v1752_v43  ;;  %v660_v48 = vmul.f32 %v658_v42, %v644_v44 }
 0x912   :  { %v661_v49 = vmul.f32 %v659_v46, %v645_v45 }
 0x914   :  { %v662_v50 = vpack.c.bf16 %v661_v49, %v660_v48 }
 0x916   :  { %1625 = vmatmul.mubr.msk.bf16.vlgmr.msra.gmra.mrb[12].mxu1 %vm691_vm9, %v662_v50 }
 0x917   :  { %1644 = vmatprep.mubr.msk.bf16.mxu1 %vm1810_vm1, %v1809_v15 }
 0x9e9   :  { %v729_v53 = vpop.f32.mrb[12].mxu1 }
 0x9ea   :  { %v730_v54 = vadd.f32 %v729_v53, %v666_v52  ;;  %v1626_v36 = vpop.f32.mrb[13].mxu1 }
 0x9eb   :  { %v732_v55 = vpop.f32.mrb[14].mxu1 }
 0x9ec   :  { %v733_v37 = vadd.f32 %v732_v55, %v666_v52  ;;  %v1627_v56 = vpop.f32.mrb[15].mxu1  ;;  %v736_v57 = vadd.f32 %v730_v54, %v585_v4 }
 0x9ee   :  { %v738_v58 = vsel %vm57_vm0, %v736_v57, 0.0  ;;  %v737_v59 = vadd.f32 %v733_v37, %v586_v5  ;;  %v2040_v5 = vld [vmem:[%s2194_s3 + $0x60] ss:$8 sps:$4 sm:$0xff]  }
 0x9ef   :  { %739 = vadd.xlane.f32.xlu0 %v738_v58  ;;  %1629 = vmatpush3.bf16.msra.mxu0 %v2040_v5 }
 0x9f0   :  { %v741_v47 = vsel %vm57_vm0, %v737_v59, 0.0  ;;  %1630 = vmatprep.subr.bf16.mxu0 %v1809_v15 }
 0x9f3   :  { %742 = vadd.xlane.f32.xlu0 %v741_v47  ;;  %1631 = vmatpush3.bf16.msra.mxu0 %v2046_v8 }
 0x9f4   :  { %1636 = vmatprep.subr.bf16.mxu0 %v1809_v15 }
 0xa7c   :  { %v740_v61 = vpop.xlane.xlu0 %739 }
 0xa7d   :  { %v744_v14 = vmul.f32 0.03125, %v740_v61 }
 0xa7f   :  { %v746_v62 = vsub.f32 %v736_v57, %v744_v14 }
 0xa80   :  { %v743_v63 = vpop.xlane.xlu0 %742 }
 0xa81   :  { %v745_v0 = vmul.f32 0.03125, %v743_v63  ;;  %v748_v26 = vmul.f32 %v746_v62, %v746_v62 }
 0xa83   :  { %v747_v1 = vsub.f32 %v737_v59, %v745_v0  ;;  %v750_v2 = vsel %vm57_vm0, %v748_v26, 0.0 }
 0xa84   :  { %751 = vadd.xlane.f32.xlu0 %v750_v2 }
 0xa85   :  { %v749_v6 = vmul.f32 %v747_v1, %v747_v1 }
 0xa87   :  { %v753_v4 = vsel %vm57_vm0, %v749_v6, 0.0 }
 0xa88   :  { %754 = vadd.xlane.f32.xlu1 %v753_v4 }
 0xb11   :  { %v752_v9 = vpop.xlane.xlu0 %751 }
 0xb12   :  { %v756_v10 = vmul.f32 0.03125, %v752_v9 }
 0xb14   :  { %v758_v11 = vadd.f32 1e-12, %v756_v10 }
 0xb15   :  { %v755_v13 = vpop.xlane.xlu1 %754 }
 0xb16   :  { %1753 = vrsqrt.f32 %v758_v11  ;;  %v757_v17 = vmul.f32 0.03125, %v755_v13 }
 0xb18   :  { %v759_v18 = vadd.f32 1e-12, %v757_v17 }
 0xb1a   :  { %1755 = vrsqrt.f32 %v759_v18 }
 0xb20   :  { %v1754_v20 = vpop.eup %1753 }
 0xb21   :  { %v762_v22 = vmul.f32 %v1754_v20, %v746_v62 }
 0xb23   :  { %v768_v28 = vmul.f32 %v767_v21, %v762_v22 }
 0xb24   :  { %v1756_v23 = vpop.eup %1755 }
 0xb25   :  { %v763_v30 = vmul.f32 %v1756_v23, %v747_v1  ;;  %v2060_v33 = vadd.f32 %v773_v31, %v768_v28 }
 0xb27   :  { %v769_v32 = vmul.f32 %v767_v21, %v763_v30 }
 0xb29   :  { %v2062_v34 = vadd.f32 %v773_v31, %v769_v32 }
 0xb2b   :  { %v789_v35 = vpack.c.bf16 %v2062_v34, %v2060_v33 }
 0xb2d   :  { %1633 = vmatmul.mubr.msk.bf16.vlgmr.msra.gmra.mrb[20].mxu0 %vm57_vm0, %v789_v35 }
 0xb2e   :  { %1638 = vmatprep.mubr.msk.bf16.mxu0 %vm1810_vm1, %v1809_v15 }
 0xc00   :  { %v843_v40 = vpop.f32.mrb[20].mxu0 }
 0xc01   :  { %v844_v41 = vadd.f32 %v843_v40, %v793_v38  ;;  %v1634_v42 = vpop.f32.mrb[21].mxu0 }
 0xc02   :  { %v846_v43 = vpop.f32.mrb[22].mxu0 }
 0xc03   :  { %v847_v44 = vadd.f32 %v846_v43, %v793_v38  ;;  %853 = vrot.lane.b32.xlu0 %v844_v41, %s1811_s27  ;;  %v1635_v45 = vpop.f32.mrb[23].mxu0 }
 0xc05   :  { %v2073_v46 = vpack.c.bf16 %v847_v44, %v844_v41  ;;  %855 = vrot.lane.b32.xlu1 %v847_v44, %s1811_s27 }
 0xc09   :  { %1009 = vrot.lane.b32.xlu1 %v2073_v46, %s1812_s28 }
 0xc75   :  { %v854_v48 = vpop.permute.xlu0 %853 }
 0xc76   :  { %859 = vxpose.xlu1.b32.start [1/2] (short) (narrow) %v854_v48, 32 }
 0xc77   :  { %v856_v49 = vpop.permute.xlu1 %855 }
 0xc7a   :  { %860 = vxpose.xlu1.b32.end [2/2] (short) (narrow) %v856_v49, 32 }
 0xc7b   :  { %v1010_v39 = vpop.permute.xlu1 %1009 }
 0xcf6   :  { %v875_v50 = vpop.trf.xlu1 }
 0xcfa   :  { %v876_v52 = vpop.trf.xlu1 }
 0xcfb   :  { %v891_v53 = vpack.c.bf16 %v876_v52, %v875_v50 }
 0xcfd   :  { %1637 = vmatpush3.bf16.msra.mxu0 %v891_v53 }
 0xcfe   :  { %v877_v54 = vpop.trf.xlu1  ;;  %1648 = vmatprep.subr.bf16.mxu0 %v1809_v15 }
 0xd00   :  { %1639 = vmatmul.mubr.msk.bf16.vlgmr.msra.gmra.mrb[24].mxu0 %vm213_vm2, %v2073_v46 }
 0xd01   :  { %1650 = vmatprep.mubr.msk.bf16.mxu0 %vm1810_vm1, %v1809_v15 }
 0xd02   :  { %v878_v36 = vpop.trf.xlu1 }
 0xd03   :  { %v892_v55 = vpack.c.bf16 %v878_v36, %v877_v54 }
 0xd05   :  { %1649 = vmatpush3.bf16.msra.mxu0 %v892_v55 }
 0xd06   :  { %1660 = vmatprep.subr.bf16.mxu0 %v1809_v15 }
 0xd08   :  { %1651 = vmatmul.mubr.msk.bf16.vlgmr.msra.gmra.mrb[28].mxu0 %vm213_vm2, %v1010_v39 }
 0xd09   :  { %1662 = vmatprep.mubr.msk.bf16.mxu0 %vm1810_vm1, %v1809_v15 }
 0xdd3   :  { %v930_v37 = vpop.f32.mrb[24].mxu0 }
 0xdd4   :  { %v931_v56 = vadd.f32 %v930_v37, %v1937_v3  ;;  %v1640_v57 = vpop.f32.mrb[25].mxu0 }
 0xdd5   :  { %v933_v58 = vpop.f32.mrb[26].mxu0 }
 0xdd6   :  { %v934_v59 = vadd.f32 %v933_v58, %v1940_v7  ;;  %v1641_v47 = vpop.f32.mrb[27].mxu0  ;;  %v937_v61 = vsel %vm213_vm2, %v931_v56, -inf }
 0xdd7   :  { %938 = vmax.xlane.f32.xlu0 %v937_v61 }
 0xdd8   :  { %v940_v14 = vsel %vm213_vm2, %v934_v59, -inf }
 0xddb   :  { %941 = vmax.xlane.f32.xlu0 %v940_v14  ;;  %v1048_v62 = vpop.f32.mrb[28].mxu0 }
 0xddc   :  { %v1049_v63 = vadd.f32 %v1048_v62, %v1937_v3  ;;  %v1652_v0 = vpop.f32.mrb[29].mxu0 }
 0xddd   :  { %v1051_v26 = vpop.f32.mrb[30].mxu0 }
 0xdde   :  { %v1052_v1 = vadd.f32 %v1051_v26, %v1940_v7  ;;  %v1653_v2 = vpop.f32.mrb[31].mxu0  ;;  %v1055_v6 = vsel %vm213_vm2, %v1049_v63, -inf }
 0xddf   :  { %1056 = vmax.xlane.f32.xlu0 %v1055_v6 }
 0xde0   :  { %v1058_v4 = vsel %vm213_vm2, %v1052_v1, -inf }
 0xde3   :  { %1059 = vmax.xlane.f32.xlu0 %v1058_v4 }
 0xe64   :  { %v939_v9 = vpop.xlane.xlu0 %938 }
 0xe65   :  { %v943_v10 = vsub.f32 %v931_v56, %v939_v9  ;;  %v1223_v9 = vrot.slane %v2054_v19, %v543_v27 }
 0xe67   :  { %v945_v11 = vmul.f32 1.442695, %v943_v10 }
 0xe68   :  { %v942_v13 = vpop.xlane.xlu0 %941 }
 0xe69   :  { %1757 = vpow2.f32 %v945_v11  ;;  %v944_v17 = vsub.f32 %v934_v59, %v942_v13 }
 0xe6b   :  { %v947_v18 = vmul.f32 1.442695, %v944_v17 }
 0xe6c   :  { %v1057_v22 = vpop.xlane.xlu0 %1056 }
 0xe6d   :  { %1759 = vpow2.f32 %v947_v18  ;;  %v1061_v23 = vsub.f32 %v1049_v63, %v1057_v22 }
 0xe6f   :  { %v1063_v30 = vmul.f32 1.442695, %v1061_v23 }
 0xe70   :  { %v1060_v28 = vpop.xlane.xlu0 %1059 }
 0xe71   :  { %v1062_v31 = vsub.f32 %v1052_v1, %v1060_v28  ;;  %1761 = vpow2.f32 %v1063_v30 }
 0xe73   :  { %v1758_v3 = vpop.eup %1757  ;;  %v1065_v32 = vmul.f32 1.442695, %v1062_v31 }
 0xe74   :  { %v949_v20 = vsel %vm213_vm2, %v1758_v3, 0.0 }
 0xe75   :  { %950 = vadd.xlane.f32.xlu0 %v949_v20  ;;  %1763 = vpow2.f32 %v1065_v32 }
 0xe77   :  { %v1760_v7 = vpop.eup %1759 }
 0xe78   :  { %v952_v21 = vsel %vm213_vm2, %v1760_v7, 0.0 }
 0xe79   :  { %953 = vadd.xlane.f32.xlu1 %v952_v21 }
 0xe7b   :  { %v1762_v35 = vpop.eup %1761 }
 0xe7c   :  { %v1067_v38 = vsel %vm213_vm2, %v1762_v35, 0.0 }
 0xe7f   :  { %v1764_v40 = vpop.eup %1763 }
 0xe80   :  { %v1070_v41 = vsel %vm213_vm2, %v1764_v40, 0.0 }
 0xe8b   :  { %961 = vrot.lane.b32.xlu0 %v2073_v46, %s1815_s1 }
 0xeaa   :  { %1068 = vadd.xlane.f32.xlu0 %v1067_v38 }
 0xeae   :  { %1071 = vadd.xlane.f32.xlu0 %v1070_v41 }
 0xec4   :  { %1078 = vrot.lane.b32.xlu0 %v2073_v46, %s1816_s9 }
 0xec8   :  { %1126 = vrot.lane.b32.xlu0 %v2046_v8, %s1817_s10 }
 0xecc   :  { %1173 = vrot.lane.b32.xlu0 %v2040_v5, %s1817_s10 }
 0xf02   :  { %v951_v42 = vpop.xlane.xlu0 %950 }
 0xf03   :  { %1765 = vrcp.f32 %v951_v42 }
 0xf06   :  { %v954_v43 = vpop.xlane.xlu1 %953  ;;  %v962_v44 = vpop.permute.xlu0 %961 }
 0xf07   :  { %1767 = vrcp.f32 %v954_v43  ;;  %1643 = vmatpush3.bf16.msra.mxu1 %v962_v44  ;;  %v1720_v43 = vld [vmem:[%s2194_s3 + $0x74] ss:$8 sps:$4 sm:$0xff]  }
 0xf08   :  { %1654 = vmatprep.subr.bf16.mxu1 %v1809_v15 }
 0xf0d   :  { %v1766_v45 = vpop.eup %1765 }
 0xf0e   :  { %v957_v49 = vmul.f32 %v1766_v45, %v1758_v3 }
 0xf11   :  { %v1768_v48 = vpop.eup %1767 }
 0xf12   :  { %v958_v39 = vmul.f32 %v1768_v48, %v1760_v7 }
 0xf14   :  { %v959_v50 = vpack.c.bf16 %v958_v39, %v957_v49 }
 0xf16   :  { %1645 = vmatmul.mubr.msk.bf16.vlgmr.msra.gmra.mrb[16].mxu1 %vm213_vm2, %v959_v50 }
 0xf17   :  { %1656 = vmatprep.mubr.msk.bf16.mxu1 %vm1810_vm1, %v1809_v15 }
 0xf37   :  { %v1069_v8 = vpop.xlane.xlu0 %1068 }
 0xf38   :  { %1769 = vrcp.f32 %v1069_v8 }
 0xf3b   :  { %v1072_v5 = vpop.xlane.xlu0 %1071 }
 0xf3c   :  { %1771 = vrcp.f32 %v1072_v5  ;;  %v1257_v5 = vrot.slane %v2054_v19, %v577_v60  ;;  %v1722_v60 = vld [vmem:[%s2194_s3 + $0x90] ss:$8 sps:$4 sm:$0xff]  }
 0xf3f   :  { %v1079_v46 = vpop.permute.xlu0 %1078 }
 0xf40   :  { %1655 = vmatpush3.bf16.msra.mxu1 %v1079_v46 }
 0xf41   :  { %1666 = vmatprep.subr.bf16.mxu1 %v1809_v15 }
 0xf42   :  { %v1770_v53 = vpop.eup %1769 }
 0xf43   :  { %v1127_v52 = vpop.permute.xlu0 %1126  ;;  %v1075_v36 = vmul.f32 %v1770_v53, %v1762_v35 }
 0xf44   :  { %1661 = vmatpush3.bf16.msra.mxu0 %v1127_v52 }
 0xf45   :  { %1672 = vmatprep.subr.bf16.mxu0 %v1809_v15 }
 0xf46   :  { %v1772_v54 = vpop.eup %1771 }
 0xf47   :  { %v1076_v55 = vmul.f32 %v1772_v54, %v1764_v40  ;;  %v1174_v56 = vpop.permute.xlu0 %1173 }
 0xf49   :  { %v1077_v37 = vpack.c.bf16 %v1076_v55, %v1075_v36  ;;  %v1263_v36 = vrot.slane %v2054_v19, %v583_v16  ;;  %v1723_v16 = vld [vmem:[%s2194_s3 + $0xa0] ss:$8 sps:$4 sm:$0xff]  }
 0xf4b   :  { %1657 = vmatmul.mubr.msk.bf16.vlgmr.msra.gmra.mrb[20].mxu1 %vm213_vm2, %v1077_v37 }
 0xf4c   :  { %1668 = vmatprep.mubr.msk.bf16.mxu1 %vm1810_vm1, %v1809_v15  ;;  %1667 = vmatpush3.bf16.msra.mxu1 %v1174_v56 }
 0xf4d   :  { %1680 = vmatprep.subr.bf16.mxu1 %v1809_v15 }
 0xfe9   :  { %v1001_v57 = vpop.f32.mrb[16].mxu1 }
 0xfea   :  { %v1646_v58 = vpop.f32.mrb[17].mxu1 }
 0xfeb   :  { %v1004_v59 = vpop.f32.mrb[18].mxu1  ;;  %v1721_v58 = vld [vmem:[%s2194_s3 + $0x80] ss:$8 sps:$4 sm:$0xff]  }
 0xfec   :  { %v1008_v47 = vpack.c.bf16 %v1004_v59, %v1001_v57  ;;  %v1647_v61 = vpop.f32.mrb[19].mxu1  ;;  %v1724_v59 = vld [vmem:[%s2194_s3 + $0xb0] ss:$8 sps:$4 sm:$0xff]  }
 0xfee   :  { %1669 = vmatmul.mubr.msk.bf16.vlgmr.msra.gmra.mrb[24].mxu1 %vm213_vm2, %v1008_v47  ;;  %v1270_v47 = vrot.slane %v2054_v19, %v590_v12 }
 0xfef   :  { %1688 = vmatprep.mubr.msk.bf16.mxu1 %vm1810_vm1, %v1809_v15  ;;  %1681 = vmatpush3.bf16.msra.mxu1 %v1721_v58 }
 0xff0   :  { %1682 = vmatprep.subr.bf16.mxu1 %v1809_v15 }
 0xff3   :  { %1683 = vmatpush3.bf16.msra.mxu1 %v1722_v60 }
 0xff4   :  { %1684 = vmatprep.subr.bf16.mxu1 %v1809_v15 }
 0xff7   :  { %1685 = vmatpush3.bf16.msra.mxu1 %v1723_v16 }
 0xff8   :  { %1686 = vmatprep.subr.bf16.mxu1 %v1809_v15 }
 0xffb   :  { %1687 = vmatpush3.bf16.msra.mxu1 %v1724_v59 }
0x101e   :  { %v1118_v14 = vpop.f32.mrb[20].mxu1 }
0x101f   :  { %v1658_v62 = vpop.f32.mrb[21].mxu1 }
0x1020   :  { %v1121_v63 = vpop.f32.mrb[22].mxu1 }
0x1021   :  { %v1125_v0 = vpack.c.bf16 %v1121_v63, %v1118_v14  ;;  %v1659_v26 = vpop.f32.mrb[23].mxu1 }
0x1023   :  { %1663 = vmatmul.mubr.msk.bf16.vlgmr.msra.gmra.mrb[32].mxu0 %vm213_vm2, %v1125_v0 }
0x1024   :  { %1676 = vmatprep.mubr.msk.bf16.mxu0 %vm1810_vm1, %v1809_v15 }
0x10c1   :  { %v1213_v1 = vpop.f32.mrb[24].mxu1 }
0x10c2   :  { %v1670_v2 = vpop.f32.mrb[25].mxu1 }
0x10c3   :  { %v1216_v6 = vpop.f32.mrb[26].mxu1 }
0x10c4   :  { %v1671_v4 = vpop.f32.mrb[27].mxu1 }
0x10f6   :  { %v1166_v10 = vpop.f32.mrb[32].mxu0 }
0x10f7   :  { %v1214_v11 = vadd.f32 %v1213_v1, %v1166_v10  ;;  %v1664_v13 = vpop.f32.mrb[33].mxu0 }
0x10f8   :  { %v1169_v17 = vpop.f32.mrb[34].mxu0 }
0x10f9   :  { %v1224_v18 = vadd.f32 %v1223_v9, %v1214_v11  ;;  %v1217_v3 = vadd.f32 %v1216_v6, %v1169_v17  ;;  %v1665_v20 = vpop.f32.mrb[35].mxu0 }
0x10fb   :  { %v1225_v7 = vadd.f32 %v1223_v9, %v1217_v3  ;;  %v1226_v21 = vadd.f32 %v1224_v18, %v2060_v33 }
0x10fd   :  { %v1228_v22 = vsel %vm57_vm0, %v1226_v21, 0.0  ;;  %v1227_v23 = vadd.f32 %v1225_v7, %v2062_v34  ;;  %v1719_v34 = vld [vmem:[%s2194_s3 + $0x64] ss:$8 sps:$4 sm:$0xff]  }
0x10fe   :  { %1229 = vadd.xlane.f32.xlu0 %v1228_v22  ;;  %1673 = vmatpush3.bf16.msra.mxu0 %v1719_v34 }
0x10ff   :  { %v1231_v28 = vsel %vm57_vm0, %v1227_v23, 0.0  ;;  %1674 = vmatprep.subr.bf16.mxu0 %v1809_v15 }
0x1100   :  { %1232 = vadd.xlane.f32.xlu1 %v1231_v28 }
0x1102   :  { %1675 = vmatpush3.bf16.msra.mxu0 %v1720_v43 }
0x118b   :  { %v1230_v30 = vpop.xlane.xlu0 %1229 }
0x118c   :  { %v1234_v27 = vmul.f32 0.03125, %v1230_v30  ;;  %v1345_v30 = vrot.slane %v2054_v19, %v665_v51 }
0x118d   :  { %v1233_v31 = vpop.xlane.xlu1 %1232 }
0x118e   :  { %v1236_v32 = vsub.f32 %v1226_v21, %v1234_v27  ;;  %v1235_v35 = vmul.f32 0.03125, %v1233_v31 }
0x1190   :  { %v1237_v38 = vsub.f32 %v1227_v23, %v1235_v35  ;;  %v1238_v40 = vmul.f32 %v1236_v32, %v1236_v32 }
0x1192   :  { %v1240_v41 = vsel %vm57_vm0, %v1238_v40, 0.0  ;;  %v1239_v42 = vmul.f32 %v1237_v38, %v1237_v38 }
0x1193   :  { %1241 = vadd.xlane.f32.xlu1 %v1240_v41 }
0x1194   :  { %v1243_v33 = vsel %vm57_vm0, %v1239_v42, 0.0 }
0x1197   :  { %1244 = vadd.xlane.f32.xlu1 %v1243_v33 }
0x1220   :  { %v1242_v44 = vpop.xlane.xlu1 %1241 }
0x1221   :  { %v1246_v45 = vmul.f32 0.03125, %v1242_v44 }
0x1223   :  { %v1248_v48 = vadd.f32 1e-12, %v1246_v45 }
0x1224   :  { %v1245_v49 = vpop.xlane.xlu1 %1244 }
0x1225   :  { %1773 = vrsqrt.f32 %v1248_v48  ;;  %v1247_v39 = vmul.f32 0.03125, %v1245_v49 }
0x1227   :  { %v1249_v50 = vadd.f32 1e-12, %v1247_v39 }
0x1229   :  { %1775 = vrsqrt.f32 %v1249_v50 }
0x122f   :  { %v1774_v8 = vpop.eup %1773 }
0x1230   :  { %v1252_v46 = vmul.f32 %v1774_v8, %v1236_v32 }
0x1232   :  { %v1258_v53 = vmul.f32 %v1257_v5, %v1252_v46 }
0x1233   :  { %v1776_v52 = vpop.eup %1775 }
0x1234   :  { %v1253_v54 = vmul.f32 %v1776_v52, %v1237_v38  ;;  %v1264_v37 = vadd.f32 %v1263_v36, %v1258_v53 }
0x1236   :  { %v1259_v55 = vmul.f32 %v1257_v5, %v1253_v54 }
0x1238   :  { %v1265_v56 = vadd.f32 %v1263_v36, %v1259_v55  ;;  %v24_v36 = vld [vmem:[%s2195_s4 + $0x10] sm:$0x3]  ;;  %s1785_s4 = scalar_lea.vmem %s1462_s15, 256 }
0x1239   :  { %v1445_v55 = vrot.slane %v24_v36, %v1884_v25  ;;  %p1786_p0 = scmp.ne.s32.totalorder %s1462_s15, %s1785_s4  ;;  %p1791_p2 = scmp.lt.s32.totalorder %s1785_s4, %s1785_s4 }
0x123a   :  { %v1266_v57 = vpack.c.bf16 %v1265_v56, %v1264_v37 }
0x123b   :  { %p1792_p3 = por %p1791_p2, %p1790_p1 }
0x123c   :  { %1677 = vmatmul.mubr.msk.bf16.vlgmr.msra.gmra.mrb[36].mxu0 %vm57_vm0, %v1266_v57  ;;  %v1451_v57 = vrot.slane %v24_v36, %v1892_v29 }
0x123d   :  { %p1793_p4 = pnand %p1792_p3, %p1786_p0 }
0x130f   :  { %v1316_v61 = vpop.f32.mrb[36].mxu0 }
0x1310   :  { %v1317_v14 = vadd.f32 %v1316_v61, %v1270_v47  ;;  %v1678_v62 = vpop.f32.mrb[37].mxu0 }
0x1311   :  { %v1319_v63 = vpop.f32.mrb[38].mxu0 }
0x1312   :  { %v1325_v0 = vmul.f32 0.044715, %v1317_v14  ;;  %v1320_v26 = vadd.f32 %v1319_v63, %v1270_v47  ;;  %v1679_v1 = vpop.f32.mrb[39].mxu0  ;;  %v1323_v20 = vmul.f32 0.5, %v1317_v14 }
0x1314   :  { %v1327_v2 = vmul.f32 %v1325_v0, %v1317_v14  ;;  %v1326_v6 = vmul.f32 0.044715, %v1320_v26  ;;  %v1324_v7 = vmul.f32 0.5, %v1320_v26 }
0x1316   :  { %v1329_v4 = vmul.f32 %v1327_v2, %v1317_v14  ;;  %v1328_v9 = vmul.f32 %v1326_v6, %v1320_v26 }
0x1318   :  { %v1331_v10 = vadd.f32 %v1329_v4, %v1317_v14  ;;  %v1330_v11 = vmul.f32 %v1328_v9, %v1320_v26 }
0x131a   :  { %v1333_v13 = vmul.f32 0.7978846, %v1331_v10  ;;  %v1332_v15 = vadd.f32 %v1330_v11, %v1320_v26 }
0x131c   :  { %1777 = vtanh.f32 %v1333_v13  ;;  %v1334_v17 = vmul.f32 0.7978846, %v1332_v15 }
0x131e   :  { %1779 = vtanh.f32 %v1334_v17 }
0x1326   :  { %v1778_v18 = vpop.eup %1777 }
0x1327   :  { %v1337_v12 = vadd.f32 1.0, %v1778_v18 }
0x1328   :  { %v1780_v3 = vpop.eup %1779 }
0x1329   :  { %v1338_v21 = vadd.f32 1.0, %v1780_v3  ;;  %v1339_v22 = vmul.f32 %v1337_v12, %v1323_v20 }
0x132b   :  { %v1340_v23 = vmul.f32 %v1338_v21, %v1324_v7 }
0x132d   :  { %v1341_v28 = vpack.c.bf16 %v1340_v23, %v1339_v22 }
0x132f   :  { %1689 = vmatmul.mubr.msk.bf16.vlgmr.msra.gmra.mrb[28].mxu1 %vm691_vm9, %v1341_v28 }
0x1402   :  { %v1407_v27 = vpop.f32.mrb[28].mxu1 }
0x1403   :  { %v1408_v31 = vadd.f32 %v1407_v27, %v1345_v30  ;;  %v1690_v32 = vpop.f32.mrb[29].mxu1 }
0x1404   :  { %v1410_v35 = vpop.f32.mrb[30].mxu1 }
0x1405   :  { %v1411_v38 = vadd.f32 %v1410_v35, %v1345_v30  ;;  %v1691_v40 = vpop.f32.mrb[31].mxu1  ;;  %v1414_v41 = vadd.f32 %v1408_v31, %v1264_v37 }
0x1407   :  { %v1416_v42 = vsel %vm57_vm0, %v1414_v41, 0.0  ;;  %v1415_v33 = vadd.f32 %v1411_v38, %v1265_v56 }
0x1408   :  { %1417 = vadd.xlane.f32.xlu1 %v1416_v42 }
0x1409   :  { %v1419_v34 = vsel %vm57_vm0, %v1415_v33, 0.0 }
0x140c   :  { %1420 = vadd.xlane.f32.xlu1 %v1419_v34 }
0x1495   :  { %v1418_v43 = vpop.xlane.xlu1 %1417 }
0x1496   :  { %v1422_v44 = vmul.f32 0.03125, %v1418_v43 }
0x1498   :  { %v1424_v45 = vsub.f32 %v1414_v41, %v1422_v44 }
0x1499   :  { %v1421_v24 = vpop.xlane.xlu1 %1420 }
0x149a   :  { %v1423_v48 = vmul.f32 0.03125, %v1421_v24  ;;  %v1426_v51 = vmul.f32 %v1424_v45, %v1424_v45 }
0x149c   :  { %v1425_v19 = vsub.f32 %v1415_v33, %v1423_v48  ;;  %v1428_v49 = vsel %vm57_vm0, %v1426_v51, 0.0 }
0x149d   :  { %1429 = vadd.xlane.f32.xlu1 %v1428_v49 }
0x149e   :  { %v1427_v39 = vmul.f32 %v1425_v19, %v1425_v19 }
0x14a0   :  { %v1431_v50 = vsel %vm57_vm0, %v1427_v39, 0.0 }
0x14a1   :  { %1432 = vadd.xlane.f32.xlu1 %v1431_v50 }
0x152a   :  { %v1430_v8 = vpop.xlane.xlu1 %1429 }
0x152b   :  { %v1434_v5 = vmul.f32 0.03125, %v1430_v8 }
0x152d   :  { %v1436_v46 = vadd.f32 1e-12, %v1434_v5 }
0x152e   :  { %v1433_v52 = vpop.xlane.xlu1 %1432 }
0x152f   :  { %1781 = vrsqrt.f32 %v1436_v46  ;;  %v1435_v53 = vmul.f32 0.03125, %v1433_v52 }
0x1531   :  { %v1437_v54 = vadd.f32 1e-12, %v1435_v53 }
0x1533   :  { %1783 = vrsqrt.f32 %v1437_v54 }
0x1539   :  { %v1782_v37 = vpop.eup %1781 }
0x153a   :  { %v1440_v56 = vmul.f32 %v1782_v37, %v1424_v45 }
0x153c   :  { %v1446_v58 = vmul.f32 %v1445_v55, %v1440_v56 }
0x153d   :  { %v1784_v60 = vpop.eup %1783 }
0x153e   :  { %v1441_v16 = vmul.f32 %v1784_v60, %v1425_v19  ;;  %v1452_v59 = vadd.f32 %v1451_v57, %v1446_v58 }
0x1540   :  { %v1447_v47 = vmul.f32 %v1445_v55, %v1441_v16  ;;  %1454 = vst.msk [vmem:[#allocation2] sm:$0xff] %vm57_vm0, %v1452_v59 }
0x1542   :  { %v1453_v61 = vadd.f32 %v1451_v57, %v1447_v47 }
0x1544   :  { %1455 = vst.msk [vmem:[#allocation2 + $0x8] sm:$0xff] %vm57_vm0, %v1453_v61 }
0x1545   :  { %1796 = shalt.err (!%p1793_p4)
}
0x1546   :  { %s1797_s18 = scalar_lea.hbm %s2196_s5, 256 }
0x1547   :  { %p1798_p5 = scmp.ne.s32.totalorder %s2196_s5, %s1797_s18  ;;  %p1801_p6 = scmp.lt.u32.totalorder %s1797_s18, %s2196_s5 }
0x1549   :  { %p1803_p7 = pnand %p1801_p6, %p1798_p5 }
0x154b   :  { %1806 = shalt.err (!%p1803_p7)
}
0x154c   :  { %s1819_s22 = smov 128   ;;  %s1820_s23 = smov 8  }
0x154d   :  { %1467 = dma.vmem_to_hbm [thread:$0]  %s1462_s15, 256, %s2196_s5, [#allocation3], %s1819_s22, %s1819_s22, %s1820_s23  }
0x154e   :  { %1807 = dma.done.wait [#allocation3], 256  }
0x154f   :  { %1808 = vsyncadd [#allocation3], 4294967040 }
0x1550   :  { %1471 = vsyncpa [#allocation3], 1 }

</bundles_post_ra>
